<compile_context>
chip_gen: v6e
topology: v6e:2x2x1
jax: 0.10.0
libtpu: 0.0.40
codegen_flags: <defaults>
</compile_context>

<pallas_src>
import numpy as np
import jax
import jax.numpy as jnp
from jax.experimental import pallas as pl
from jax.experimental.pallas import tpu as pltpu

IN_DIM = 8
OUT_DIM = 8
HID = OUT_DIM            # LSTM hidden size
FEAT2 = 2 * OUT_DIM      # GAT in/out channels
GATE = 4 * HID           # LSTM gate width
LANE = 128               # lane width of both packed slabs

# ---- weight-slab row layout (shared by pack_weights and the kernel) --------
_WBIG_R0 = 0
_WBIG_R1 = _WBIG_R0 + 2 * IN_DIM        # block-diag [W1 0; 0 W2]  (16, 16)
_WG_R0 = _WBIG_R1
_WG_R1 = _WG_R0 + FEAT2                 # [Wg | Wg@att_dst | Wg@att_src]
_WIH_R0 = _WG_R1
_WIH_R1 = _WIH_R0 + FEAT2               # LSTM W_ih^T (16, 32)
_WHH_R0 = _WIH_R1
_WHH_R1 = _WHH_R0 + HID                 # LSTM W_hh^T (8, 32)
_B12_R = _WHH_R1                        # [b1 | b2]   (1, 16)
_BG_R = _B12_R + 1                      # GAT bias    (1, 16)
_BL_R = _BG_R + 1                       # LSTM bias   (1, 32)
_WSLAB_ROWS = 64                        # next multiple of 8 >= 59


# ----------------------------------------------------------------------------
# Fused kernel: FG1+FG2 + GATConv + node_history + LSTM (single invocation)
# ----------------------------------------------------------------------------
def _make_kernel(T, N, ncur):
    TN = T * N
    TC = T * ncur
    # activation-slab row layout
    R_DIR0, R_DIR1 = 0, TN                      # [BDin | BDout]   (TN, 2*TN)
    R_ADJ0, R_ADJ1 = TN, 2 * TN                 # blockdiag(A)+I   (TN, TN)
    R_G0, R_G1 = 2 * TN, 2 * TN + TC            # node_history     (TC, TN)
    R_X0, R_X1 = R_G1, R_G1 + 2 * TN            # x_wide           (2*TN, 16)

    def kernel(act_ref, w_ref, o_ref):
        # ---- unpack the single weight slab (static, lane-0 slices) ---------
        w_big = w_ref[_WBIG_R0:_WBIG_R1, 0:FEAT2]           # (16, 16)
        wg_ext = w_ref[_WG_R0:_WG_R1, 0:FEAT2 + 2]          # (16, 18)
        wih = w_ref[_WIH_R0:_WIH_R1, 0:GATE]                # (16, 32)
        whh = w_ref[_WHH_R0:_WHH_R1, 0:GATE]                # (8, 32)
        b12 = w_ref[_B12_R:_B12_R + 1, 0:FEAT2]             # (1, 16)
        bg = w_ref[_BG_R:_BG_R + 1, 0:FEAT2]                # (1, 16)
        bl = w_ref[_BL_R:_BL_R + 1, 0:GATE]                 # (1, 32)

        # ---- unpack the single activation slab -----------------------------
        bd_dir = act_ref[R_DIR0:R_DIR1, 0:2 * TN]           # (TN, 2*TN)
        adjbd = act_ref[R_ADJ0:R_ADJ1, 0:TN]                # (TN, TN)
        gbd = act_ref[R_G0:R_G1, 0:TN]                      # (TC, TN)
        x_wide = act_ref[R_X0:R_X1, 0:2 * IN_DIM]           # (2*TN, 16)

        # ---- FG1 + FG2: projection + ONE block-diagonal aggregation --------
        # xw rows 0..TN-1 = [xW1 | 0], rows TN..2TN-1 = [0 | xW2]
        xw = jnp.dot(x_wide, w_big, preferred_element_type=jnp.float32)
        # nf = [tanh(Ain@xW1+b1) | tanh(Aout@xW2+b2)] in flat (T*N, FEAT2) form
        nf = jnp.tanh(jnp.dot(bd_dir, xw, preferred_element_type=jnp.float32)
                      + b12)                                 # (TN, FEAT2)

        # ---- GATConv(FEAT2 -> FEAT2, heads=1, concat=False) ----------------
        # one matmul gives h and both attention logits (folded extra columns)
        hext = jnp.dot(nf, wg_ext, preferred_element_type=jnp.float32)
        h = hext[:, 0:FEAT2]                                 # (TN, FEAT2)
        a_dst = hext[:, FEAT2:FEAT2 + 1]                     # (TN, 1)
        a_src = hext[:, FEAT2 + 1:FEAT2 + 2]                 # (TN, 1)
        e = a_dst + jnp.transpose(a_src)                     # e[i,j]=dst_i+src_j
        e = jnp.maximum(e, 0.2 * e)                          # LeakyReLU(0.2)
        e = jnp.where(adjbd > 0.0, e, -1e30)                 # self-loops in adjbd
        e = e - jnp.max(e, axis=-1, keepdims=True)
        p = jnp.exp(e)
        alpha = p * pl.reciprocal(jnp.sum(p, axis=-1, keepdims=True),
                                  approx=True)               # row softmax
        feat = jnp.dot(alpha, h, preferred_element_type=jnp.float32) + bg
        # F.dropout(p=0.5): eval-mode identity

        # ---- node_history: one block-diagonal one-hot gather matmul --------
        seqs = jnp.dot(gbd, feat, preferred_element_type=jnp.float32)  # (TC,16)

        # ---- LSTM: batched input projection + serial recurrence ------------
        gates_x = (jnp.dot(seqs, wih, preferred_element_type=jnp.float32)
                   + bl)                                      # (TC, 4H)

        h_t = jnp.zeros((ncur, HID), jnp.float32)
        c_t = jnp.zeros((ncur, HID), jnp.float32)
        for t in range(T):                                    # T small & static
            gx = gates_x[t * ncur:(t + 1) * ncur, :]          # (ncur, 4H)
            if t == 0:
                gates = gx                                    # h_0 == 0
            else:
                # h_t @ W_hh as HID broadcast-FMA steps on the VPU (keeps the
                # serial recurrence off the MXU push/pop latency path).
                gh = h_t[:, 0:1] * whh[0:1, :]
                for k in range(1, HID):
                    gh = gh + h_t[:, k:k + 1] * whh[k:k + 1, :]
                gates = gx + gh
            sg = jax.nn.sigmoid(gates)                        # full-width once
            tg = jnp.tanh(gates)                              # full-width once
            i_g = sg[:, 0 * HID:1 * HID]                      # torch order i,f,g,o
            f_g = sg[:, 1 * HID:2 * HID]
            g_g = tg[:, 2 * HID:3 * HID]
            o_g = sg[:, 3 * HID:4 * HID]
            c_t = f_g * c_t + i_g * g_g
            h_t = o_g * jnp.tanh(c_t)

        o_ref[...] = h_t                                      # output[-1] only

    return kernel


# ----------------------------------------------------------------------------
# Wrapper: builds the two packed, lane-dense slabs and calls the kernel
# ----------------------------------------------------------------------------
def _block_diag(a):
    """(T, R, C) -> (T*R, T*C) block-diagonal."""
    T, R, C = a.shape
    eye = jnp.eye(T, dtype=a.dtype)
    return jnp.einsum('tp,trc->trpc', eye, a).reshape(T * R, T * C)


def ip_feat_extractor_forward(x_seq, ain_seq, aout_seq, adj_seq, gmat, w_slab):
    T, N, _ = x_seq.shape
    ncur = gmat.shape[1]
    TN, TC = T * N, T * ncur
    assert 2 * TN <= LANE and TN <= LANE and 2 * IN_DIM <= LANE
    assert gmat.shape[2] == N

    f32 = jnp.float32
    # x_wide: rows 0..TN-1 = [x | 0], rows TN..2TN-1 = [0 | x]
    x2d = x_seq.reshape(TN, IN_DIM).astype(f32)
    zer = jnp.zeros_like(x2d)
    x_wide = jnp.concatenate(
        [jnp.concatenate([x2d, zer], axis=1),
         jnp.concatenate([zer, x2d], axis=1)], axis=0)        # (2*TN, 16)

    bd_dir = jnp.concatenate([_block_diag(ain_seq.astype(f32)),
                              _block_diag(aout_seq.astype(f32))], axis=1)
    adjbd = _block_diag(adj_seq.astype(f32)
                        + jnp.eye(N, dtype=f32)[None])        # GAT self-loops
    gbd = _block_diag(gmat.astype(f32))                       # (TC, TN)

    rows = TN + TN + TC + 2 * TN
    rows_pad = -(-rows // 8) * 8
    act = jnp.zeros((rows_pad, LANE), f32)
    act = act.at[0:TN, 0:2 * TN].set(bd_dir)
    act = act.at[TN:2 * TN, 0:TN].set(adjbd)
    act = act.at[2 * TN:2 * TN + TC, 0:TN].set(gbd)
    act = act.at[2 * TN + TC:rows, 0:2 * IN_DIM].set(x_wide)

    kernel = _make_kernel(T, N, ncur)
    return pl.pallas_call(
        kernel,
        out_shape=jax.ShapeDtypeStruct((ncur, HID), jnp.float32),
        in_specs=[pl.BlockSpec(memory_space=pltpu.MemorySpace.VMEM),
                  pl.BlockSpec(memory_space=pltpu.MemorySpace.VMEM)],
        out_specs=pl.BlockSpec(memory_space=pltpu.MemorySpace.VMEM),
    )(act, w_slab)


# ----------------------------------------------------------------------------
# Host-side: node_history index bookkeeping as a one-hot gather matrix
# ----------------------------------------------------------------------------
def build_gather_matrix(ips_list, cur_ips, n_nodes):
    """g[t, idx2[k], idx1[k]] = 1, matching aa[idx2] = output[idx1]."""
    T = len(ips_list)
    ncur = len(cur_ips)
    g = np.zeros((T, ncur, n_nodes), np.float32)
    for t, ips in enumerate(ips_list):
        idx1 = np.where(np.isin(ips, cur_ips))[0]
        idx2 = np.where(np.isin(cur_ips, ips))[0]
        g[t, idx2, idx1] = 1.0
    return jnp.asarray(g)


# ----------------------------------------------------------------------------
# Host-side: pack the 9 weight/bias tensors into one lane-dense (64,128) slab
# ----------------------------------------------------------------------------
def pack_weights(params):
    (w1, b1, w2, b2, wg, bg, asrc, adst), (wih, whh, bl) = params
    to_np = lambda a: np.asarray(a, np.float32)
    w1, b1, w2, b2 = map(to_np, (w1, b1, w2, b2))
    wg, bg, asrc, adst = map(to_np, (wg, bg, asrc, adst))
    wih, whh, bl = map(to_np, (wih, whh, bl))

    slab = np.zeros((_WSLAB_ROWS, LANE), np.float32)
    # FG1/FG2 weights as one block-diagonal (2*IN_DIM, FEAT2) matrix
    slab[_WBIG_R0:_WBIG_R0 + IN_DIM, 0:OUT_DIM] = w1
    slab[_WBIG_R0 + IN_DIM:_WBIG_R1, OUT_DIM:FEAT2] = w2
    # GAT weight with attention projections folded in as two extra columns
    slab[_WG_R0:_WG_R1, 0:FEAT2] = wg
    slab[_WG_R0:_WG_R1, FEAT2:FEAT2 + 1] = wg @ adst.reshape(FEAT2, 1)
    slab[_WG_R0:_WG_R1, FEAT2 + 1:FEAT2 + 2] = wg @ asrc.reshape(FEAT2, 1)
    # LSTM weights (stored [in, out] so kernel does x @ W)
    slab[_WIH_R0:_WIH_R1, 0:GATE] = wih
    slab[_WHH_R0:_WHH_R1, 0:GATE] = whh
    # biases
    slab[_B12_R, 0:OUT_DIM] = b1.ravel()
    slab[_B12_R, OUT_DIM:FEAT2] = b2.ravel()
    slab[_BG_R, 0:FEAT2] = bg.ravel()
    slab[_BL_R, 0:GATE] = bl.ravel()                 # b_ih + b_hh folded
    return jnp.asarray(slab)


# ----------------------------------------------------------------------------
# Deterministic parameter init + example run
# ----------------------------------------------------------------------------
def init_params(key):
    ks = jax.random.split(key, 11)
    s1 = 1.0 / np.sqrt(IN_DIM)
    s2 = 1.0 / np.sqrt(FEAT2)
    sh = 1.0 / np.sqrt(HID)
    w1 = jax.random.normal(ks[0], (IN_DIM, OUT_DIM), jnp.float32) * s1
    b1 = jax.random.normal(ks[1], (1, OUT_DIM), jnp.float32) * 0.01
    w2 = jax.random.normal(ks[2], (IN_DIM, OUT_DIM), jnp.float32) * s1
    b2 = jax.random.normal(ks[3], (1, OUT_DIM), jnp.float32) * 0.01
    wg = jax.random.normal(ks[4], (FEAT2, FEAT2), jnp.float32) * s2
    bg = jax.random.normal(ks[5], (1, FEAT2), jnp.float32) * 0.01
    asrc = jax.random.normal(ks[6], (1, FEAT2), jnp.float32) * s2
    adst = jax.random.normal(ks[7], (1, FEAT2), jnp.float32) * s2
    wih = jax.random.normal(ks[8], (FEAT2, GATE), jnp.float32) * sh
    whh = jax.random.normal(ks[9], (HID, GATE), jnp.float32) * sh
    bl = jax.random.normal(ks[10], (1, GATE), jnp.float32) * sh
    return (w1, b1, w2, b2, wg, bg, asrc, adst), (wih, whh, bl)


if __name__ == "__main__":
    T, N, NCUR = 4, 16, 16
    key = jax.random.PRNGKey(0)
    kp, kx, ka1, ka2, ka3 = jax.random.split(key, 5)

    params = init_params(kp)
    w_slab = pack_weights(params)          # packed once, host-side

    x_seq = jax.random.normal(kx, (T, N, IN_DIM), jnp.float32)
    ain_seq = (jax.random.uniform(ka1, (T, N, N)) < 0.3).astype(jnp.float32)
    aout_seq = (jax.random.uniform(ka2, (T, N, N)) < 0.3).astype(jnp.float32)
    adj_seq = (jax.random.uniform(ka3, (T, N, N)) < 0.3).astype(jnp.float32)

    # Node-id bookkeeping for node_history (partial overlap with cur_ips).
    cur_ips = np.arange(5, 5 + NCUR)
    ips_list = [np.arange(3 + i, 3 + i + N) for i in range(T)]
    gmat = build_gather_matrix(ips_list, cur_ips, N)

    fwd = jax.jit(ip_feat_extractor_forward)
    out = fwd(x_seq, ain_seq, aout_seq, adj_seq, gmat, w_slab)
    out = jax.block_until_ready(out)

    assert out.shape == (NCUR, HID), out.shape
    assert bool(jnp.all(jnp.isfinite(out)))
    print("KERNEL_OK")
</pallas_src>

<mosaic_0001>
module attributes {stable_mosaic.version = 11 : i64} {
  func.func @kernel(%arg0: memref<320x128xf32, #tpu.memory_space<vmem>>, %arg1: memref<64x128xf32, #tpu.memory_space<vmem>>, %arg2: memref<16x8xf32, #tpu.memory_space<vmem>>) attributes {dimension_semantics = [], scalar_prefetch = 0 : i64, scratch_operands = 0 : i64, tpu.core_type = #tpu.core_type<tc>} {
    %c0 = arith.constant 0 : index
    %c0_0 = arith.constant 0 : index
    %0 = vector.load %arg1[%c0, %c0_0] : memref<64x128xf32, #tpu.memory_space<vmem>>, vector<16x16xf32>
    %c16 = arith.constant 16 : index
    %c0_1 = arith.constant 0 : index
    %1 = vector.load %arg1[%c16, %c0_1] : memref<64x128xf32, #tpu.memory_space<vmem>>, vector<16x18xf32>
    %c32 = arith.constant 32 : index
    %c0_2 = arith.constant 0 : index
    %2 = vector.load %arg1[%c32, %c0_2] : memref<64x128xf32, #tpu.memory_space<vmem>>, vector<16x32xf32>
    %c48 = arith.constant 48 : index
    %c0_3 = arith.constant 0 : index
    %3 = vector.load %arg1[%c48, %c0_3] : memref<64x128xf32, #tpu.memory_space<vmem>>, vector<8x32xf32>
    %c56 = arith.constant 56 : index
    %c0_4 = arith.constant 0 : index
    %4 = vector.load %arg1[%c56, %c0_4] : memref<64x128xf32, #tpu.memory_space<vmem>>, vector<1x16xf32>
    %c57 = arith.constant 57 : index
    %c0_5 = arith.constant 0 : index
    %5 = vector.load %arg1[%c57, %c0_5] : memref<64x128xf32, #tpu.memory_space<vmem>>, vector<1x16xf32>
    %c58 = arith.constant 58 : index
    %c0_6 = arith.constant 0 : index
    %6 = vector.load %arg1[%c58, %c0_6] : memref<64x128xf32, #tpu.memory_space<vmem>>, vector<1x32xf32>
    %c0_7 = arith.constant 0 : index
    %c0_8 = arith.constant 0 : index
    %7 = vector.load %arg0[%c0_7, %c0_8] : memref<320x128xf32, #tpu.memory_space<vmem>>, vector<64x128xf32>
    %c64 = arith.constant 64 : index
    %c0_9 = arith.constant 0 : index
    %8 = vector.load %arg0[%c64, %c0_9] : memref<320x128xf32, #tpu.memory_space<vmem>>, vector<64x64xf32>
    %c128 = arith.constant 128 : index
    %c0_10 = arith.constant 0 : index
    %9 = vector.load %arg0[%c128, %c0_10] : memref<320x128xf32, #tpu.memory_space<vmem>>, vector<64x64xf32>
    %c192 = arith.constant 192 : index
    %c0_11 = arith.constant 0 : index
    %10 = vector.load %arg0[%c192, %c0_11] : memref<320x128xf32, #tpu.memory_space<vmem>>, vector<128x16xf32>
    %cst = arith.constant dense<0.000000e+00> : vector<128x16xf32>
    %11 = tpu.matmul %10, %0, %cst {dimension_numbers = #tpu.dot_dimension_numbers<[1], [0], [0], [1], [0, 0, 1, 1], [], []>} : vector<128x16xf32>, vector<16x16xf32>, vector<128x16xf32> -> vector<128x16xf32>
    %cst_12 = arith.constant dense<0.000000e+00> : vector<64x16xf32>
    %12 = tpu.matmul %7, %11, %cst_12 {dimension_numbers = #tpu.dot_dimension_numbers<[1], [0], [0], [1], [0, 0, 1, 1], [], []>} : vector<64x128xf32>, vector<128x16xf32>, vector<64x16xf32> -> vector<64x16xf32>
    %13 = vector.broadcast %4 : vector<1x16xf32> to vector<64x16xf32>
    %14 = arith.addf %12, %13 : vector<64x16xf32>
    %15 = math.tanh %14 : vector<64x16xf32>
    %cst_13 = arith.constant dense<0.000000e+00> : vector<64x18xf32>
    %16 = tpu.matmul %15, %1, %cst_13 {dimension_numbers = #tpu.dot_dimension_numbers<[1], [0], [0], [1], [0, 0, 1, 1], [], []>} : vector<64x16xf32>, vector<16x18xf32>, vector<64x18xf32> -> vector<64x18xf32>
    %17 = vector.extract_strided_slice %16 {offsets = [0, 0], sizes = [64, 16], strides = [1, 1]} : vector<64x18xf32> to vector<64x16xf32>
    %18 = vector.extract_strided_slice %16 {offsets = [0, 16], sizes = [64, 1], strides = [1, 1]} : vector<64x18xf32> to vector<64x1xf32>
    %19 = vector.extract_strided_slice %16 {offsets = [0, 17], sizes = [64, 1], strides = [1, 1]} : vector<64x18xf32> to vector<64x1xf32>
    %20 = tpu.transpose %19, [1, 0] : vector<64x1xf32> -> vector<1x64xf32>
    %21 = vector.broadcast %18 : vector<64x1xf32> to vector<64x64xf32>
    %22 = vector.broadcast %20 : vector<1x64xf32> to vector<64x64xf32>
    %23 = arith.addf %21, %22 : vector<64x64xf32>
    %cst_14 = arith.constant 2.000000e-01 : f32
    %24 = vector.broadcast %cst_14 : f32 to vector<64x64xf32>
    %25 = arith.mulf %24, %23 : vector<64x64xf32>
    %26 = arith.maximumf %23, %25 : vector<64x64xf32>
    %cst_15 = arith.constant 0.000000e+00 : f32
    %27 = vector.broadcast %cst_15 : f32 to vector<64x64xf32>
    %28 = arith.cmpf ogt, %8, %27 : vector<64x64xf32>
    %cst_16 = arith.constant -1.000000e+30 : f32
    %29 = vector.broadcast %cst_16 : f32 to vector<64x64xf32>
    %30 = arith.select %28, %26, %29 : vector<64x64xi1>, vector<64x64xf32>
    %cst_17 = arith.constant dense<0xFF800000> : vector<64xf32>
    %31 = vector.multi_reduction <maximumf>, %30, %cst_17 [1] : vector<64x64xf32> to vector<64xf32>
    %32 = vector.shape_cast %31 : vector<64xf32> to vector<64x1xf32>
    %33 = vector.broadcast %32 : vector<64x1xf32> to vector<64x64xf32>
    %34 = arith.subf %30, %33 : vector<64x64xf32>
    %35 = math.exp %34 : vector<64x64xf32>
    %cst_18 = arith.constant dense<0.000000e+00> : vector<64xf32>
    %36 = vector.multi_reduction <add>, %35, %cst_18 [1] : vector<64x64xf32> to vector<64xf32>
    %37 = vector.shape_cast %36 : vector<64xf32> to vector<64x1xf32>
    %38 = tpu.reciprocal %37 {approx = true} : vector<64x1xf32> -> vector<64x1xf32>
    %39 = vector.broadcast %38 : vector<64x1xf32> to vector<64x64xf32>
    %40 = arith.mulf %35, %39 : vector<64x64xf32>
    %cst_19 = arith.constant dense<0.000000e+00> : vector<64x16xf32>
    %41 = tpu.matmul %40, %17, %cst_19 {dimension_numbers = #tpu.dot_dimension_numbers<[1], [0], [0], [1], [0, 0, 1, 1], [], []>} : vector<64x64xf32>, vector<64x16xf32>, vector<64x16xf32> -> vector<64x16xf32>
    %42 = vector.broadcast %5 : vector<1x16xf32> to vector<64x16xf32>
    %43 = arith.addf %41, %42 : vector<64x16xf32>
    %cst_20 = arith.constant dense<0.000000e+00> : vector<64x16xf32>
    %44 = tpu.matmul %9, %43, %cst_20 {dimension_numbers = #tpu.dot_dimension_numbers<[1], [0], [0], [1], [0, 0, 1, 1], [], []>} : vector<64x64xf32>, vector<64x16xf32>, vector<64x16xf32> -> vector<64x16xf32>
    %cst_21 = arith.constant dense<0.000000e+00> : vector<64x32xf32>
    %45 = tpu.matmul %44, %2, %cst_21 {dimension_numbers = #tpu.dot_dimension_numbers<[1], [0], [0], [1], [0, 0, 1, 1], [], []>} : vector<64x16xf32>, vector<16x32xf32>, vector<64x32xf32> -> vector<64x32xf32>
    %46 = vector.broadcast %6 : vector<1x32xf32> to vector<64x32xf32>
    %47 = arith.addf %45, %46 : vector<64x32xf32>
    %cst_22 = arith.constant 0.000000e+00 : f32
    %48 = vector.broadcast %cst_22 : f32 to vector<16x8xf32>
    %49 = vector.extract_strided_slice %47 {offsets = [0, 0], sizes = [16, 32], strides = [1, 1]} : vector<64x32xf32> to vector<16x32xf32>
    %50 = arith.negf %49 : vector<16x32xf32>
    %51 = math.exp %50 : vector<16x32xf32>
    %cst_23 = arith.constant 1.000000e+00 : f32
    %52 = vector.broadcast %cst_23 : f32 to vector<16x32xf32>
    %53 = arith.addf %52, %51 : vector<16x32xf32>
    %54 = arith.divf %52, %53 : vector<16x32xf32>
    %55 = math.tanh %49 : vector<16x32xf32>
    %56 = vector.extract_strided_slice %54 {offsets = [0, 0], sizes = [16, 8], strides = [1, 1]} : vector<16x32xf32> to vector<16x8xf32>
    %57 = vector.extract_strided_slice %54 {offsets = [0, 8], sizes = [16, 8], strides = [1, 1]} : vector<16x32xf32> to vector<16x8xf32>
    %58 = vector.extract_strided_slice %55 {offsets = [0, 16], sizes = [16, 8], strides = [1, 1]} : vector<16x32xf32> to vector<16x8xf32>
    %59 = vector.extract_strided_slice %54 {offsets = [0, 24], sizes = [16, 8], strides = [1, 1]} : vector<16x32xf32> to vector<16x8xf32>
    %60 = arith.mulf %57, %48 : vector<16x8xf32>
    %61 = arith.mulf %56, %58 : vector<16x8xf32>
    %62 = arith.addf %60, %61 : vector<16x8xf32>
    %63 = math.tanh %62 : vector<16x8xf32>
    %64 = arith.mulf %59, %63 : vector<16x8xf32>
    %65 = vector.extract_strided_slice %47 {offsets = [16, 0], sizes = [16, 32], strides = [1, 1]} : vector<64x32xf32> to vector<16x32xf32>
    %66 = vector.extract_strided_slice %64 {offsets = [0, 0], sizes = [16, 1], strides = [1, 1]} : vector<16x8xf32> to vector<16x1xf32>
    %67 = vector.extract_strided_slice %3 {offsets = [0, 0], sizes = [1, 32], strides = [1, 1]} : vector<8x32xf32> to vector<1x32xf32>
    %68 = vector.broadcast %66 : vector<16x1xf32> to vector<16x32xf32>
    %69 = vector.broadcast %67 : vector<1x32xf32> to vector<16x32xf32>
    %70 = arith.mulf %68, %69 : vector<16x32xf32>
    %71 = vector.extract_strided_slice %64 {offsets = [0, 1], sizes = [16, 1], strides = [1, 1]} : vector<16x8xf32> to vector<16x1xf32>
    %72 = vector.extract_strided_slice %3 {offsets = [1, 0], sizes = [1, 32], strides = [1, 1]} : vector<8x32xf32> to vector<1x32xf32>
    %73 = vector.broadcast %71 : vector<16x1xf32> to vector<16x32xf32>
    %74 = vector.broadcast %72 : vector<1x32xf32> to vector<16x32xf32>
    %75 = arith.mulf %73, %74 : vector<16x32xf32>
    %76 = arith.addf %70, %75 : vector<16x32xf32>
    %77 = vector.extract_strided_slice %64 {offsets = [0, 2], sizes = [16, 1], strides = [1, 1]} : vector<16x8xf32> to vector<16x1xf32>
    %78 = vector.extract_strided_slice %3 {offsets = [2, 0], sizes = [1, 32], strides = [1, 1]} : vector<8x32xf32> to vector<1x32xf32>
    %79 = vector.broadcast %77 : vector<16x1xf32> to vector<16x32xf32>
    %80 = vector.broadcast %78 : vector<1x32xf32> to vector<16x32xf32>
    %81 = arith.mulf %79, %80 : vector<16x32xf32>
    %82 = arith.addf %76, %81 : vector<16x32xf32>
    %83 = vector.extract_strided_slice %64 {offsets = [0, 3], sizes = [16, 1], strides = [1, 1]} : vector<16x8xf32> to vector<16x1xf32>
    %84 = vector.extract_strided_slice %3 {offsets = [3, 0], sizes = [1, 32], strides = [1, 1]} : vector<8x32xf32> to vector<1x32xf32>
    %85 = vector.broadcast %83 : vector<16x1xf32> to vector<16x32xf32>
    %86 = vector.broadcast %84 : vector<1x32xf32> to vector<16x32xf32>
    %87 = arith.mulf %85, %86 : vector<16x32xf32>
    %88 = arith.addf %82, %87 : vector<16x32xf32>
    %89 = vector.extract_strided_slice %64 {offsets = [0, 4], sizes = [16, 1], strides = [1, 1]} : vector<16x8xf32> to vector<16x1xf32>
    %90 = vector.extract_strided_slice %3 {offsets = [4, 0], sizes = [1, 32], strides = [1, 1]} : vector<8x32xf32> to vector<1x32xf32>
    %91 = vector.broadcast %89 : vector<16x1xf32> to vector<16x32xf32>
    %92 = vector.broadcast %90 : vector<1x32xf32> to vector<16x32xf32>
    %93 = arith.mulf %91, %92 : vector<16x32xf32>
    %94 = arith.addf %88, %93 : vector<16x32xf32>
    %95 = vector.extract_strided_slice %64 {offsets = [0, 5], sizes = [16, 1], strides = [1, 1]} : vector<16x8xf32> to vector<16x1xf32>
    %96 = vector.extract_strided_slice %3 {offsets = [5, 0], sizes = [1, 32], strides = [1, 1]} : vector<8x32xf32> to vector<1x32xf32>
    %97 = vector.broadcast %95 : vector<16x1xf32> to vector<16x32xf32>
    %98 = vector.broadcast %96 : vector<1x32xf32> to vector<16x32xf32>
    %99 = arith.mulf %97, %98 : vector<16x32xf32>
    %100 = arith.addf %94, %99 : vector<16x32xf32>
    %101 = vector.extract_strided_slice %64 {offsets = [0, 6], sizes = [16, 1], strides = [1, 1]} : vector<16x8xf32> to vector<16x1xf32>
    %102 = vector.extract_strided_slice %3 {offsets = [6, 0], sizes = [1, 32], strides = [1, 1]} : vector<8x32xf32> to vector<1x32xf32>
    %103 = vector.broadcast %101 : vector<16x1xf32> to vector<16x32xf32>
    %104 = vector.broadcast %102 : vector<1x32xf32> to vector<16x32xf32>
    %105 = arith.mulf %103, %104 : vector<16x32xf32>
    %106 = arith.addf %100, %105 : vector<16x32xf32>
    %107 = vector.extract_strided_slice %64 {offsets = [0, 7], sizes = [16, 1], strides = [1, 1]} : vector<16x8xf32> to vector<16x1xf32>
    %108 = vector.extract_strided_slice %3 {offsets = [7, 0], sizes = [1, 32], strides = [1, 1]} : vector<8x32xf32> to vector<1x32xf32>
    %109 = vector.broadcast %107 : vector<16x1xf32> to vector<16x32xf32>
    %110 = vector.broadcast %108 : vector<1x32xf32> to vector<16x32xf32>
    %111 = arith.mulf %109, %110 : vector<16x32xf32>
    %112 = arith.addf %106, %111 : vector<16x32xf32>
    %113 = arith.addf %65, %112 : vector<16x32xf32>
    %114 = arith.negf %113 : vector<16x32xf32>
    %115 = math.exp %114 : vector<16x32xf32>
    %cst_24 = arith.constant 1.000000e+00 : f32
    %116 = vector.broadcast %cst_24 : f32 to vector<16x32xf32>
    %117 = arith.addf %116, %115 : vector<16x32xf32>
    %118 = arith.divf %116, %117 : vector<16x32xf32>
    %119 = math.tanh %113 : vector<16x32xf32>
    %120 = vector.extract_strided_slice %118 {offsets = [0, 0], sizes = [16, 8], strides = [1, 1]} : vector<16x32xf32> to vector<16x8xf32>
    %121 = vector.extract_strided_slice %118 {offsets = [0, 8], sizes = [16, 8], strides = [1, 1]} : vector<16x32xf32> to vector<16x8xf32>
    %122 = vector.extract_strided_slice %119 {offsets = [0, 16], sizes = [16, 8], strides = [1, 1]} : vector<16x32xf32> to vector<16x8xf32>
    %123 = vector.extract_strided_slice %118 {offsets = [0, 24], sizes = [16, 8], strides = [1, 1]} : vector<16x32xf32> to vector<16x8xf32>
    %124 = arith.mulf %121, %62 : vector<16x8xf32>
    %125 = arith.mulf %120, %122 : vector<16x8xf32>
    %126 = arith.addf %124, %125 : vector<16x8xf32>
    %127 = math.tanh %126 : vector<16x8xf32>
    %128 = arith.mulf %123, %127 : vector<16x8xf32>
    %129 = vector.extract_strided_slice %47 {offsets = [32, 0], sizes = [16, 32], strides = [1, 1]} : vector<64x32xf32> to vector<16x32xf32>
    %130 = vector.extract_strided_slice %128 {offsets = [0, 0], sizes = [16, 1], strides = [1, 1]} : vector<16x8xf32> to vector<16x1xf32>
    %131 = vector.extract_strided_slice %3 {offsets = [0, 0], sizes = [1, 32], strides = [1, 1]} : vector<8x32xf32> to vector<1x32xf32>
    %132 = vector.broadcast %130 : vector<16x1xf32> to vector<16x32xf32>
    %133 = vector.broadcast %131 : vector<1x32xf32> to vector<16x32xf32>
    %134 = arith.mulf %132, %133 : vector<16x32xf32>
    %135 = vector.extract_strided_slice %128 {offsets = [0, 1], sizes = [16, 1], strides = [1, 1]} : vector<16x8xf32> to vector<16x1xf32>
    %136 = vector.extract_strided_slice %3 {offsets = [1, 0], sizes = [1, 32], strides = [1, 1]} : vector<8x32xf32> to vector<1x32xf32>
    %137 = vector.broadcast %135 : vector<16x1xf32> to vector<16x32xf32>
    %138 = vector.broadcast %136 : vector<1x32xf32> to vector<16x32xf32>
    %139 = arith.mulf %137, %138 : vector<16x32xf32>
    %140 = arith.addf %134, %139 : vector<16x32xf32>
    %141 = vector.extract_strided_slice %128 {offsets = [0, 2], sizes = [16, 1], strides = [1, 1]} : vector<16x8xf32> to vector<16x1xf32>
    %142 = vector.extract_strided_slice %3 {offsets = [2, 0], sizes = [1, 32], strides = [1, 1]} : vector<8x32xf32> to vector<1x32xf32>
    %143 = vector.broadcast %141 : vector<16x1xf32> to vector<16x32xf32>
    %144 = vector.broadcast %142 : vector<1x32xf32> to vector<16x32xf32>
    %145 = arith.mulf %143, %144 : vector<16x32xf32>
    %146 = arith.addf %140, %145 : vector<16x32xf32>
    %147 = vector.extract_strided_slice %128 {offsets = [0, 3], sizes = [16, 1], strides = [1, 1]} : vector<16x8xf32> to vector<16x1xf32>
    %148 = vector.extract_strided_slice %3 {offsets = [3, 0], sizes = [1, 32], strides = [1, 1]} : vector<8x32xf32> to vector<1x32xf32>
    %149 = vector.broadcast %147 : vector<16x1xf32> to vector<16x32xf32>
    %150 = vector.broadcast %148 : vector<1x32xf32> to vector<16x32xf32>
    %151 = arith.mulf %149, %150 : vector<16x32xf32>
    %152 = arith.addf %146, %151 : vector<16x32xf32>
    %153 = vector.extract_strided_slice %128 {offsets = [0, 4], sizes = [16, 1], strides = [1, 1]} : vector<16x8xf32> to vector<16x1xf32>
    %154 = vector.extract_strided_slice %3 {offsets = [4, 0], sizes = [1, 32], strides = [1, 1]} : vector<8x32xf32> to vector<1x32xf32>
    %155 = vector.broadcast %153 : vector<16x1xf32> to vector<16x32xf32>
    %156 = vector.broadcast %154 : vector<1x32xf32> to vector<16x32xf32>
    %157 = arith.mulf %155, %156 : vector<16x32xf32>
    %158 = arith.addf %152, %157 : vector<16x32xf32>
    %159 = vector.extract_strided_slice %128 {offsets = [0, 5], sizes = [16, 1], strides = [1, 1]} : vector<16x8xf32> to vector<16x1xf32>
    %160 = vector.extract_strided_slice %3 {offsets = [5, 0], sizes = [1, 32], strides = [1, 1]} : vector<8x32xf32> to vector<1x32xf32>
    %161 = vector.broadcast %159 : vector<16x1xf32> to vector<16x32xf32>
    %162 = vector.broadcast %160 : vector<1x32xf32> to vector<16x32xf32>
    %163 = arith.mulf %161, %162 : vector<16x32xf32>
    %164 = arith.addf %158, %163 : vector<16x32xf32>
    %165 = vector.extract_strided_slice %128 {offsets = [0, 6], sizes = [16, 1], strides = [1, 1]} : vector<16x8xf32> to vector<16x1xf32>
    %166 = vector.extract_strided_slice %3 {offsets = [6, 0], sizes = [1, 32], strides = [1, 1]} : vector<8x32xf32> to vector<1x32xf32>
    %167 = vector.broadcast %165 : vector<16x1xf32> to vector<16x32xf32>
    %168 = vector.broadcast %166 : vector<1x32xf32> to vector<16x32xf32>
    %169 = arith.mulf %167, %168 : vector<16x32xf32>
    %170 = arith.addf %164, %169 : vector<16x32xf32>
    %171 = vector.extract_strided_slice %128 {offsets = [0, 7], sizes = [16, 1], strides = [1, 1]} : vector<16x8xf32> to vector<16x1xf32>
    %172 = vector.extract_strided_slice %3 {offsets = [7, 0], sizes = [1, 32], strides = [1, 1]} : vector<8x32xf32> to vector<1x32xf32>
    %173 = vector.broadcast %171 : vector<16x1xf32> to vector<16x32xf32>
    %174 = vector.broadcast %172 : vector<1x32xf32> to vector<16x32xf32>
    %175 = arith.mulf %173, %174 : vector<16x32xf32>
    %176 = arith.addf %170, %175 : vector<16x32xf32>
    %177 = arith.addf %129, %176 : vector<16x32xf32>
    %178 = arith.negf %177 : vector<16x32xf32>
    %179 = math.exp %178 : vector<16x32xf32>
    %cst_25 = arith.constant 1.000000e+00 : f32
    %180 = vector.broadcast %cst_25 : f32 to vector<16x32xf32>
    %181 = arith.addf %180, %179 : vector<16x32xf32>
    %182 = arith.divf %180, %181 : vector<16x32xf32>
    %183 = math.tanh %177 : vector<16x32xf32>
    %184 = vector.extract_strided_slice %182 {offsets = [0, 0], sizes = [16, 8], strides = [1, 1]} : vector<16x32xf32> to vector<16x8xf32>
    %185 = vector.extract_strided_slice %182 {offsets = [0, 8], sizes = [16, 8], strides = [1, 1]} : vector<16x32xf32> to vector<16x8xf32>
    %186 = vector.extract_strided_slice %183 {offsets = [0, 16], sizes = [16, 8], strides = [1, 1]} : vector<16x32xf32> to vector<16x8xf32>
    %187 = vector.extract_strided_slice %182 {offsets = [0, 24], sizes = [16, 8], strides = [1, 1]} : vector<16x32xf32> to vector<16x8xf32>
    %188 = arith.mulf %185, %126 : vector<16x8xf32>
    %189 = arith.mulf %184, %186 : vector<16x8xf32>
    %190 = arith.addf %188, %189 : vector<16x8xf32>
    %191 = math.tanh %190 : vector<16x8xf32>
    %192 = arith.mulf %187, %191 : vector<16x8xf32>
    %193 = vector.extract_strided_slice %47 {offsets = [48, 0], sizes = [16, 32], strides = [1, 1]} : vector<64x32xf32> to vector<16x32xf32>
    %194 = vector.extract_strided_slice %192 {offsets = [0, 0], sizes = [16, 1], strides = [1, 1]} : vector<16x8xf32> to vector<16x1xf32>
    %195 = vector.extract_strided_slice %3 {offsets = [0, 0], sizes = [1, 32], strides = [1, 1]} : vector<8x32xf32> to vector<1x32xf32>
    %196 = vector.broadcast %194 : vector<16x1xf32> to vector<16x32xf32>
    %197 = vector.broadcast %195 : vector<1x32xf32> to vector<16x32xf32>
    %198 = arith.mulf %196, %197 : vector<16x32xf32>
    %199 = vector.extract_strided_slice %192 {offsets = [0, 1], sizes = [16, 1], strides = [1, 1]} : vector<16x8xf32> to vector<16x1xf32>
    %200 = vector.extract_strided_slice %3 {offsets = [1, 0], sizes = [1, 32], strides = [1, 1]} : vector<8x32xf32> to vector<1x32xf32>
    %201 = vector.broadcast %199 : vector<16x1xf32> to vector<16x32xf32>
    %202 = vector.broadcast %200 : vector<1x32xf32> to vector<16x32xf32>
    %203 = arith.mulf %201, %202 : vector<16x32xf32>
    %204 = arith.addf %198, %203 : vector<16x32xf32>
    %205 = vector.extract_strided_slice %192 {offsets = [0, 2], sizes = [16, 1], strides = [1, 1]} : vector<16x8xf32> to vector<16x1xf32>
    %206 = vector.extract_strided_slice %3 {offsets = [2, 0], sizes = [1, 32], strides = [1, 1]} : vector<8x32xf32> to vector<1x32xf32>
    %207 = vector.broadcast %205 : vector<16x1xf32> to vector<16x32xf32>
    %208 = vector.broadcast %206 : vector<1x32xf32> to vector<16x32xf32>
    %209 = arith.mulf %207, %208 : vector<16x32xf32>
    %210 = arith.addf %204, %209 : vector<16x32xf32>
    %211 = vector.extract_strided_slice %192 {offsets = [0, 3], sizes = [16, 1], strides = [1, 1]} : vector<16x8xf32> to vector<16x1xf32>
    %212 = vector.extract_strided_slice %3 {offsets = [3, 0], sizes = [1, 32], strides = [1, 1]} : vector<8x32xf32> to vector<1x32xf32>
    %213 = vector.broadcast %211 : vector<16x1xf32> to vector<16x32xf32>
    %214 = vector.broadcast %212 : vector<1x32xf32> to vector<16x32xf32>
    %215 = arith.mulf %213, %214 : vector<16x32xf32>
    %216 = arith.addf %210, %215 : vector<16x32xf32>
    %217 = vector.extract_strided_slice %192 {offsets = [0, 4], sizes = [16, 1], strides = [1, 1]} : vector<16x8xf32> to vector<16x1xf32>
    %218 = vector.extract_strided_slice %3 {offsets = [4, 0], sizes = [1, 32], strides = [1, 1]} : vector<8x32xf32> to vector<1x32xf32>
    %219 = vector.broadcast %217 : vector<16x1xf32> to vector<16x32xf32>
    %220 = vector.broadcast %218 : vector<1x32xf32> to vector<16x32xf32>
    %221 = arith.mulf %219, %220 : vector<16x32xf32>
    %222 = arith.addf %216, %221 : vector<16x32xf32>
    %223 = vector.extract_strided_slice %192 {offsets = [0, 5], sizes = [16, 1], strides = [1, 1]} : vector<16x8xf32> to vector<16x1xf32>
    %224 = vector.extract_strided_slice %3 {offsets = [5, 0], sizes = [1, 32], strides = [1, 1]} : vector<8x32xf32> to vector<1x32xf32>
    %225 = vector.broadcast %223 : vector<16x1xf32> to vector<16x32xf32>
    %226 = vector.broadcast %224 : vector<1x32xf32> to vector<16x32xf32>
    %227 = arith.mulf %225, %226 : vector<16x32xf32>
    %228 = arith.addf %222, %227 : vector<16x32xf32>
    %229 = vector.extract_strided_slice %192 {offsets = [0, 6], sizes = [16, 1], strides = [1, 1]} : vector<16x8xf32> to vector<16x1xf32>
    %230 = vector.extract_strided_slice %3 {offsets = [6, 0], sizes = [1, 32], strides = [1, 1]} : vector<8x32xf32> to vector<1x32xf32>
    %231 = vector.broadcast %229 : vector<16x1xf32> to vector<16x32xf32>
    %232 = vector.broadcast %230 : vector<1x32xf32> to vector<16x32xf32>
    %233 = arith.mulf %231, %232 : vector<16x32xf32>
    %234 = arith.addf %228, %233 : vector<16x32xf32>
    %235 = vector.extract_strided_slice %192 {offsets = [0, 7], sizes = [16, 1], strides = [1, 1]} : vector<16x8xf32> to vector<16x1xf32>
    %236 = vector.extract_strided_slice %3 {offsets = [7, 0], sizes = [1, 32], strides = [1, 1]} : vector<8x32xf32> to vector<1x32xf32>
    %237 = vector.broadcast %235 : vector<16x1xf32> to vector<16x32xf32>
    %238 = vector.broadcast %236 : vector<1x32xf32> to vector<16x32xf32>
    %239 = arith.mulf %237, %238 : vector<16x32xf32>
    %240 = arith.addf %234, %239 : vector<16x32xf32>
    %241 = arith.addf %193, %240 : vector<16x32xf32>
    %242 = arith.negf %241 : vector<16x32xf32>
    %243 = math.exp %242 : vector<16x32xf32>
    %cst_26 = arith.constant 1.000000e+00 : f32
    %244 = vector.broadcast %cst_26 : f32 to vector<16x32xf32>
    %245 = arith.addf %244, %243 : vector<16x32xf32>
    %246 = arith.divf %244, %245 : vector<16x32xf32>
    %247 = math.tanh %241 : vector<16x32xf32>
    %248 = vector.extract_strided_slice %246 {offsets = [0, 0], sizes = [16, 8], strides = [1, 1]} : vector<16x32xf32> to vector<16x8xf32>
    %249 = vector.extract_strided_slice %246 {offsets = [0, 8], sizes = [16, 8], strides = [1, 1]} : vector<16x32xf32> to vector<16x8xf32>
    %250 = vector.extract_strided_slice %247 {offsets = [0, 16], sizes = [16, 8], strides = [1, 1]} : vector<16x32xf32> to vector<16x8xf32>
    %251 = vector.extract_strided_slice %246 {offsets = [0, 24], sizes = [16, 8], strides = [1, 1]} : vector<16x32xf32> to vector<16x8xf32>
    %252 = arith.mulf %249, %190 : vector<16x8xf32>
    %253 = arith.mulf %248, %250 : vector<16x8xf32>
    %254 = arith.addf %252, %253 : vector<16x8xf32>
    %255 = math.tanh %254 : vector<16x8xf32>
    %256 = arith.mulf %251, %255 : vector<16x8xf32>
    %c0_27 = arith.constant 0 : index
    %c0_28 = arith.constant 0 : index
    %257 = vector.load %arg2[%c0_27, %c0_28] : memref<16x8xf32, #tpu.memory_space<vmem>>, vector<16x8xf32>
    tpu.vector_store %arg2[%c0_27, %c0_28], %256 {strides = array<i32>} : memref<16x8xf32, #tpu.memory_space<vmem>>, vector<16x8xf32>,
    return
  }
}

</mosaic_0001>

<bundles_post_ra>
// kernel: ip_feat_extractor_forward.1
= control target key start
LH: loop header
LB: loop body
LE: loop exit
PB: predicated region body
PF: predicated region fallthrough
CT: control target
= control target key end

     0   :  { %vm61_vm0 = vcmask 130048   ;;  %s2152_s11 = smov 111   ;;  %vm641_vm2 = vcmask 523264   ;;  %s2153_s23 = smov 112   ;;  %vm1651_vm10 = vcmask 64512   ;;  %s2583_s1 = inlined_call_operand.vmem [shape: f32[64,128], index: 1, kind: input, shape index: {}]   ;;  %s2584_s0 = inlined_call_operand.vmem [shape: f32[320,128], index: 0, kind: input, shape index: {}]   ;;  %s2585_s2 = inlined_call_operand.vmem [shape: f32[16,8], index: 2, kind: output, shape index: {}]  }
   0x1   :  { %v12_v0 = vld [vmem:[%s2583_s1 + $0x8] sm:$0xff]  ;;  %v11_v1 = vld [vmem:[%s2583_s1] sm:$0xff]  ;;  %v47_v4 = vld [vmem:[%s2584_s0 + $0xd0] sm:$0xff]  ;;  %s2154_s24 = smov 8   ;;  %s2157_s25 = smov 16  }
   0x2   :  { %v45_v2 = vld [vmem:[%s2584_s0 + $0xc0] sm:$0xff]  ;;  %1811 = vmatprep.subr.mxu0 %v12_v0  ;;  %v46_v3 = vld [vmem:[%s2584_s0 + $0xc8] sm:$0xff]  ;;  %v48_v5 = vld [vmem:[%s2584_s0 + $0xd8] sm:$0xff] }
   0x3   :  { %1815 = vmatprep.mubr.msk.f32.mxu0 %vm61_vm0, %v45_v2  ;;  %1812 = vmatpush3.msra.mxu0 %v12_v0  ;;  %v49_v6 = vld [vmem:[%s2584_s0 + $0xe0] sm:$0xff]  ;;  %v50_v7 = vld [vmem:[%s2584_s0 + $0xe8] sm:$0xff]  ;;  %v51_v8 = vld [vmem:[%s2584_s0 + $0xf0] sm:$0xff] }
   0x4   :  { %1813 = vmatprep.subr.mxu0 %v11_v1  ;;  %v52_v9 = vld [vmem:[%s2584_s0 + $0xf8] sm:$0xff]  ;;  %v53_v10 = vld [vmem:[%s2584_s0 + $0x100] sm:$0xff]  ;;  %v54_v11 = vld [vmem:[%s2584_s0 + $0x108] sm:$0xff] }
   0x5   :  { %1814 = vmatpush3.msra.mxu0 %v11_v1  ;;  %v55_v12 = vld [vmem:[%s2584_s0 + $0x110] sm:$0xff]  ;;  %v56_v13 = vld [vmem:[%s2584_s0 + $0x118] sm:$0xff]  ;;  %v57_v14 = vld [vmem:[%s2584_s0 + $0x120] sm:$0xff] }
   0x6   :  { %1816 = vmatmul.mubr.msk.f32.vlgmr.msra.gmra.mxu0 %vm61_vm0, %v46_v3  ;;  %v58_v15 = vld [vmem:[%s2584_s0 + $0x128] sm:$0xff]  ;;  %v59_v16 = vld [vmem:[%s2584_s0 + $0x130] sm:$0xff]  ;;  %v60_v17 = vld [vmem:[%s2584_s0 + $0x138] sm:$0xff] }
   0x7   :  { %1818 = vmatprep.mubr.msk.f32.mxu0 %vm61_vm0, %v47_v4  ;;  %v21_v18 = vld [vmem:[%s2584_s0] sm:$0xff]  ;;  %v14_v19 = vld [vmem:[%s2583_s1 + $0x18] sm:$0xff]  ;;  %v22_v36 = vld [vmem:[%s2584_s0 + $0x8] sm:$0xff] }
   0x8   :  { %1871 = vmatprep.mubr.f32.mxu1 %v21_v18  ;;  %1883 = vmatprep.subr.mxu0 %v14_v19  ;;  %v23_v37 = vld [vmem:[%s2584_s0 + $0x10] sm:$0xff]  ;;  %v24_v38 = vld [vmem:[%s2584_s0 + $0x18] sm:$0xff]  ;;  %v25_v39 = vld [vmem:[%s2584_s0 + $0x20] sm:$0xff] }
   0x9   :  { %1884 = vmatpush3.msra.mxu0 %v14_v19  ;;  %v26_v40 = vld [vmem:[%s2584_s0 + $0x28] sm:$0xff]  ;;  %v27_v41 = vld [vmem:[%s2584_s0 + $0x30] sm:$0xff]  ;;  %v28_v42 = vld [vmem:[%s2584_s0 + $0x38] sm:$0xff] }
   0xa   :  { %1819 = vmatmul.mubr.msk.f32.gmra.mxu0 %vm61_vm0, %v48_v5  ;;  %v13_v43 = vld [vmem:[%s2583_s1 + $0x10] sm:$0xff]  ;;  %v1674_v44 = vld [vmem:[%s2583_s1 + $0x38] ss:$0 sm:$0xff]  ;;  %v2151_v5 = vmov 16  }
   0xb   :  { %1821 = vmatprep.mubr.msk.f32.mxu0 %vm61_vm0, %v49_v6  ;;  %1885 = vmatprep.subr.mxu0 %v13_v43 }
   0xc   :  { %1886 = vmatpush3.msra.mxu0 %v13_v43  ;;  %1990 = vset.pattern.permute.xlu0 %v2151_v5 }
   0xd   :  { %1991 = vset.pattern.permute.xlu1 %v2151_v5 }
   0xe   :  { %1822 = vmatmul.mubr.msk.f32.gmra.mxu0 %vm61_vm0, %v50_v7 }
   0xf   :  { %1824 = vmatprep.mubr.msk.f32.mxu0 %vm61_vm0, %v51_v8 }
  0x12   :  { %1825 = vmatmul.mubr.msk.f32.gmra.mxu0 %vm61_vm0, %v52_v9 }
  0x13   :  { %1827 = vmatprep.mubr.msk.f32.mxu0 %vm61_vm0, %v53_v10 }
  0x16   :  { %1828 = vmatmul.mubr.msk.f32.gmra.mxu0 %vm61_vm0, %v54_v11 }
  0x17   :  { %1830 = vmatprep.mubr.msk.f32.mxu0 %vm61_vm0, %v55_v12 }
  0x1a   :  { %1831 = vmatmul.mubr.msk.f32.gmra.mxu0 %vm61_vm0, %v56_v13 }
  0x1b   :  { %1833 = vmatprep.mubr.msk.f32.mxu0 %vm61_vm0, %v57_v14 }
  0x1e   :  { %1834 = vmatmul.mubr.msk.f32.gmra.mxu0 %vm61_vm0, %v58_v15 }
  0x1f   :  { %1836 = vmatprep.mubr.msk.f32.mxu0 %vm61_vm0, %v59_v16 }
  0x22   :  { %1837 = vmatmul.mubr.msk.f32.gmra.mxu0 %vm61_vm0, %v60_v17 }
  0xc6   :  { %v1817_v20 = vpop.f32.mrf.mxu0 }
  0xc8   :  { %v176_v21 = vpop.f32.mrf.mxu0 }
  0xca   :  { %v1820_v22 = vpop.f32.mrf.mxu0 }
  0xcc   :  { %v186_v23 = vpop.f32.mrf.mxu0 }
  0xce   :  { %v1823_v24 = vpop.f32.mrf.mxu0 }
  0xd0   :  { %v196_v25 = vpop.f32.mrf.mxu0 }
  0xd2   :  { %v1826_v26 = vpop.f32.mrf.mxu0 }
  0xd4   :  { %v206_v27 = vpop.f32.mrf.mxu0 }
  0xd6   :  { %v1829_v28 = vpop.f32.mrf.mxu0 }
  0xd8   :  { %v216_v29 = vpop.f32.mrf.mxu0 }
  0xda   :  { %v1832_v30 = vpop.f32.mrf.mxu0 }
  0xdc   :  { %v226_v31 = vpop.f32.mrf.mxu0 }
  0xde   :  { %v1835_v32 = vpop.f32.mrf.mxu0 }
  0xe0   :  { %v236_v33 = vpop.f32.mrf.mxu0 }
  0xe2   :  { %v1838_v34 = vpop.f32.mrf.mxu0 }
  0xe3   :  { %1839 = vmatprep.subr.mxu1 %v1838_v34 }
  0xe4   :  { %v246_v35 = vpop.f32.mrf.mxu0  ;;  %1840 = vmatpush3.msra.mxu1 %v1838_v34 }
  0xe5   :  { %1841 = vmatprep.subr.mxu1 %v246_v35 }
  0xe6   :  { %1842 = vmatpush3.msra.mxu1 %v246_v35 }
  0xe7   :  { %1843 = vmatprep.subr.mxu1 %v1835_v32 }
  0xe8   :  { %1844 = vmatpush3.msra.mxu1 %v1835_v32  ;;  %v29_v32 = vld [vmem:[%s2584_s0 + $0x40] sm:$0xff] }
  0xe9   :  { %1845 = vmatprep.subr.mxu1 %v236_v33  ;;  %vm625_vm1 = vcmp.gt.f32.partialorder %v29_v32, 0.0 }
  0xea   :  { %1846 = vmatpush3.msra.mxu1 %v236_v33 }
  0xeb   :  { %1847 = vmatprep.subr.mxu1 %v1832_v30 }
  0xec   :  { %1848 = vmatpush3.msra.mxu1 %v1832_v30 }
  0xed   :  { %1849 = vmatprep.subr.mxu1 %v226_v31 }
  0xee   :  { %1850 = vmatpush3.msra.mxu1 %v226_v31 }
  0xef   :  { %1851 = vmatprep.subr.mxu1 %v1829_v28 }
  0xf0   :  { %1852 = vmatpush3.msra.mxu1 %v1829_v28 }
  0xf1   :  { %1853 = vmatprep.subr.mxu1 %v216_v29 }
  0xf2   :  { %1854 = vmatpush3.msra.mxu1 %v216_v29 }
  0xf3   :  { %1855 = vmatprep.subr.mxu1 %v1826_v26 }
  0xf4   :  { %1856 = vmatpush3.msra.mxu1 %v1826_v26 }
  0xf5   :  { %1857 = vmatprep.subr.mxu1 %v206_v27 }
  0xf6   :  { %1858 = vmatpush3.msra.mxu1 %v206_v27 }
  0xf7   :  { %1859 = vmatprep.subr.mxu1 %v1823_v24 }
  0xf8   :  { %1860 = vmatpush3.msra.mxu1 %v1823_v24  ;;  %v597_v24 = vlaneseq }
  0xf9   :  { %1861 = vmatprep.subr.mxu1 %v196_v25 }
  0xfa   :  { %1862 = vmatpush3.msra.mxu1 %v196_v25  ;;  %v2291_v26 = vshrl.u32 %v597_v24, 7 }
  0xfb   :  { %1863 = vmatprep.subr.mxu1 %v1820_v22 }
  0xfc   :  { %1864 = vmatpush3.msra.mxu1 %v1820_v22  ;;  %v599_v28 = vsub.s32 0, %v2291_v26 }
  0xfd   :  { %1865 = vmatprep.subr.mxu1 %v186_v23 }
  0xfe   :  { %1866 = vmatpush3.msra.mxu1 %v186_v23 }
  0xff   :  { %1867 = vmatprep.subr.mxu1 %v1817_v20 }
 0x100   :  { %1868 = vmatpush3.msra.mxu1 %v1817_v20 }
 0x101   :  { %1869 = vmatprep.subr.mxu1 %v176_v21 }
 0x102   :  { %1870 = vmatpush3.msra.mxu1 %v176_v21 }
 0x103   :  { %1872 = vmatmul.mubr.f32.vlgmr.msra.gmra.mxu1 %v22_v36 }
 0x104   :  { %1874 = vmatprep.mubr.f32.mxu1 %v23_v37  ;;  %v30_v37 = vld [vmem:[%s2584_s0 + $0x48] sm:$0xff] }
 0x105   :  { %vm626_vm3 = vcmp.gt.f32.partialorder %v30_v37, 0.0 }
 0x107   :  { %1875 = vmatmul.mubr.f32.gmra.mxu1 %v24_v38 }
 0x108   :  { %1877 = vmatprep.mubr.f32.mxu1 %v25_v39 }
 0x10b   :  { %1878 = vmatmul.mubr.f32.gmra.mxu1 %v26_v40 }
 0x10c   :  { %1880 = vmatprep.mubr.f32.mxu1 %v27_v41 }
 0x10f   :  { %1881 = vmatmul.mubr.f32.gmra.mxu1 %v28_v42 }
 0x1c3   :  { %v1873_v45 = vpop.f32.mrf.mxu1 }
 0x1c4   :  { %v331_v46 = vadd.f32 %v1873_v45, %v1674_v44  ;;  %v31_v45 = vld [vmem:[%s2584_s0 + $0x50] sm:$0xff] }
 0x1c5   :  { %v325_v47 = vpop.f32.mrf.mxu1  ;;  %vm627_vm4 = vcmp.gt.f32.partialorder %v31_v45, 0.0 }
 0x1c6   :  { %v326_v48 = vadd.f32 %v1674_v44, %v325_v47 }
 0x1c7   :  { %v1876_v49 = vpop.f32.mrf.mxu1 }
 0x1c8   :  { %2039 = vtanh.f32 %v326_v48  ;;  %v341_v50 = vadd.f32 %v1876_v49, %v1674_v44 }
 0x1c9   :  { %2041 = vtanh.f32 %v331_v46  ;;  %v335_v51 = vpop.f32.mrf.mxu1 }
 0x1ca   :  { %v336_v52 = vadd.f32 %v1674_v44, %v335_v51  ;;  %2043 = vtanh.f32 %v341_v50  ;;  %v32_v51 = vld [vmem:[%s2584_s0 + $0x58] sm:$0xff] }
 0x1cb   :  { %v1879_v53 = vpop.f32.mrf.mxu1  ;;  %vm628_vm5 = vcmp.gt.f32.partialorder %v32_v51, 0.0 }
 0x1cc   :  { %2045 = vtanh.f32 %v336_v52  ;;  %v351_v54 = vadd.f32 %v1879_v53, %v1674_v44 }
 0x1cd   :  { %v345_v55 = vpop.f32.mrf.mxu1 }
 0x1ce   :  { %v346_v56 = vadd.f32 %v1674_v44, %v345_v55  ;;  %2047 = vtanh.f32 %v351_v54 }
 0x1cf   :  { %v1882_v57 = vpop.f32.mrf.mxu1 }
 0x1d0   :  { %2049 = vtanh.f32 %v346_v56  ;;  %v361_v58 = vadd.f32 %v1882_v57, %v1674_v44 }
 0x1d1   :  { %v355_v59 = vpop.f32.mrf.mxu1 }
 0x1d2   :  { %v356_v60 = vadd.f32 %v1674_v44, %v355_v59  ;;  %2051 = vtanh.f32 %v361_v58  ;;  %v33_v58 = vld [vmem:[%s2584_s0 + $0x60] sm:$0xff] }
 0x1d3   :  { %vm629_vm6 = vcmp.gt.f32.partialorder %v33_v58, 0.0 }
 0x1d4   :  { %2053 = vtanh.f32 %v356_v60 }
 0x1d5   :  { %v2040_v61 = vpop.eup %2039 }
 0x1d6   :  { %v2042_v62 = vpop.eup %2041  ;;  %1887 = vmatprep.mubr.msk.f32.mxu0 %vm61_vm0, %v2040_v61 }
 0x1d7   :  { %1888 = vmatmul.mubr.msk.f32.vlgmr.msra.gmra.mxu0 %vm61_vm0, %v2042_v62  ;;  %v2044_v63 = vpop.eup %2043 }
 0x1d9   :  { %v2046_v0 = vpop.eup %2045 }
 0x1da   :  { %1890 = vmatprep.mubr.msk.f32.mxu0 %vm61_vm0, %v2046_v0  ;;  %v34_v0 = vld [vmem:[%s2584_s0 + $0x68] sm:$0xff] }
 0x1db   :  { %1891 = vmatmul.mubr.msk.f32.gmra.mxu0 %vm61_vm0, %v2044_v63  ;;  %v2048_v1 = vpop.eup %2047  ;;  %vm630_vm7 = vcmp.gt.f32.partialorder %v34_v0, 0.0 }
 0x1dd   :  { %v2050_v2 = vpop.eup %2049 }
 0x1de   :  { %1893 = vmatprep.mubr.msk.f32.mxu0 %vm61_vm0, %v2050_v2 }
 0x1df   :  { %1894 = vmatmul.mubr.msk.f32.gmra.mxu0 %vm61_vm0, %v2048_v1  ;;  %v2052_v3 = vpop.eup %2051 }
 0x1e1   :  { %v2054_v4 = vpop.eup %2053 }
 0x1e2   :  { %1896 = vmatprep.mubr.msk.f32.mxu0 %vm61_vm0, %v2054_v4 }
 0x1e3   :  { %1897 = vmatmul.mubr.msk.f32.gmra.mxu0 %vm61_vm0, %v2052_v3 }
 0x297   :  { %v1889_v6 = vpop.f32.mrf.mxu0 }
 0x299   :  { %v462_v7 = vpop.f32.mrf.mxu0 }
 0x29a   :  { %509 = vrot.lane.b32.xlu0 %v462_v7, %s2152_s11 }
 0x29b   :  { %v1892_v8 = vpop.f32.mrf.mxu0 }
 0x29c   :  { %515 = vrot.lane.b32.xlu1 %v1892_v8, %s2152_s11 }
 0x29d   :  { %v472_v9 = vpop.f32.mrf.mxu0 }
 0x29e   :  { %511 = vrot.lane.b32.xlu0 %v1889_v6, %s2152_s11 }
 0x29f   :  { %v1895_v10 = vpop.f32.mrf.mxu0 }
 0x2a0   :  { %513 = vrot.lane.b32.xlu1 %v472_v9, %s2152_s11 }
 0x2a1   :  { %v482_v11 = vpop.f32.mrf.mxu0 }
 0x2a2   :  { %517 = vrot.lane.b32.xlu0 %v482_v11, %s2152_s11 }
 0x2a3   :  { %v1898_v12 = vpop.f32.mrf.mxu0 }
 0x2a4   :  { %519 = vrot.lane.b32.xlu1 %v1895_v10, %s2152_s11  ;;  %1899 = vmatprep.subr.mxu1 %v1898_v12 }
 0x2a5   :  { %v492_v13 = vpop.f32.mrf.mxu0  ;;  %1900 = vmatpush3.msra.mxu1 %v1898_v12 }
 0x2a6   :  { %521 = vrot.lane.b32.xlu0 %v492_v13, %s2152_s11  ;;  %1901 = vmatprep.subr.mxu1 %v492_v13 }
 0x2a7   :  { %1902 = vmatpush3.msra.mxu1 %v492_v13 }
 0x2a8   :  { %523 = vrot.lane.b32.xlu1 %v1898_v12, %s2152_s11  ;;  %1903 = vmatprep.subr.mxu1 %v1895_v10 }
 0x2a9   :  { %1904 = vmatpush3.msra.mxu1 %v1895_v10 }
 0x2aa   :  { %566 = vperm.xlu0 %1990, %v462_v7   ;;  %1905 = vmatprep.subr.mxu1 %v482_v11 }
 0x2ab   :  { %1906 = vmatpush3.msra.mxu1 %v482_v11 }
 0x2ac   :  { %570 = vperm.xlu1 %1991, %v1889_v6   ;;  %1907 = vmatprep.subr.mxu1 %v1892_v8 }
 0x2ad   :  { %1908 = vmatpush3.msra.mxu1 %v1892_v8 }
 0x2ae   :  { %578 = vperm.xlu0 %1990, %v1892_v8   ;;  %1909 = vmatprep.subr.mxu1 %v472_v9 }
 0x2af   :  { %1910 = vmatpush3.msra.mxu1 %v472_v9 }
 0x2b0   :  { %574 = vperm.xlu1 %1991, %v472_v9   ;;  %1911 = vmatprep.subr.mxu1 %v1889_v6 }
 0x2b1   :  { %1912 = vmatpush3.msra.mxu1 %v1889_v6 }
 0x2b2   :  { %586 = vperm.xlu0 %1990, %v1895_v10   ;;  %1913 = vmatprep.subr.mxu1 %v462_v7 }
 0x2b3   :  { %1914 = vmatpush3.msra.mxu1 %v462_v7  ;;  %v35_v7 = vld [vmem:[%s2584_s0 + $0x70] sm:$0xff] }
 0x2b4   :  { %582 = vperm.xlu1 %1991, %v482_v11   ;;  %vm631_vm8 = vcmp.gt.f32.partialorder %v35_v7, 0.0 }
 0x2b6   :  { %594 = vperm.xlu0 %1990, %v1898_v12   ;;  %v36_v12 = vld [vmem:[%s2584_s0 + $0x78] sm:$0xff] }
 0x2b7   :  { %vm632_vm9 = vcmp.gt.f32.partialorder %v36_v12, 0.0 }
 0x2b8   :  { %590 = vperm.xlu1 %1991, %v492_v13  }
 0x30c   :  { %v510_v14 = vpop.permute.xlu0 %509 }
 0x30d   :  { %533 = vxpose.xlu1.b32.start [1/8] (short) (narrow) %v510_v14, 8 }
 0x30e   :  { %v516_v15 = vpop.permute.xlu1 %515 }
 0x310   :  { %v512_v16 = vpop.permute.xlu0 %511 }
 0x311   :  { %534 = vxpose.xlu1.b32.cont [2/8] (short) (narrow) %v512_v16, 8 }
 0x312   :  { %v514_v17 = vpop.permute.xlu1 %513 }
 0x314   :  { %v518_v18 = vpop.permute.xlu0 %517 }
 0x315   :  { %535 = vxpose.xlu1.b32.cont [3/8] (short) (narrow) %v514_v17, 8 }
 0x316   :  { %v520_v19 = vpop.permute.xlu1 %519 }
 0x318   :  { %v522_v20 = vpop.permute.xlu0 %521 }
 0x319   :  { %536 = vxpose.xlu1.b32.cont [4/8] (short) (narrow) %v516_v15, 8 }
 0x31a   :  { %v524_v21 = vpop.permute.xlu1 %523 }
 0x31d   :  { %537 = vxpose.xlu1.b32.cont [5/8] (short) (narrow) %v518_v18, 8 }
 0x321   :  { %538 = vxpose.xlu1.b32.cont [6/8] (short) (narrow) %v520_v19, 8 }
 0x325   :  { %539 = vxpose.xlu1.b32.cont [7/8] (short) (narrow) %v522_v20, 8  ;;  %v567_v29 = vpop.permute.xlu0 %566 }
 0x327   :  { %v571_v22 = vpop.permute.xlu1 %570 }
 0x329   :  { %540 = vxpose.xlu1.b32.end [8/8] (short) (narrow) %v524_v21, 8  ;;  %v579_v39 = vpop.permute.xlu0 %578 }
 0x32b   :  { %v575_v23 = vpop.permute.xlu1 %574 }
 0x32d   :  { %v587_v52 = vpop.permute.xlu0 %586 }
 0x32f   :  { %v583_v25 = vpop.permute.xlu1 %582 }
 0x331   :  { %v595_v1 = vpop.permute.xlu0 %594 }
 0x333   :  { %v591_v27 = vpop.permute.xlu1 %590 }
 0x389   :  { %v549_v30 = vpop.trf.xlu1 }
 0x38a   :  { %v600_v31 = vrot.slane %v549_v30, %v599_v28 }
 0x38c   :  { %v601_v33 = vadd.f32 %v600_v31, %v567_v29  ;;  %v602_v34 = vadd.f32 %v600_v31, %v571_v22  ;;  %v603_v35 = vadd.f32 %v600_v31, %v575_v23  ;;  %v604_v43 = vadd.f32 %v600_v31, %v579_v39 }
 0x38d   :  { %v605_v50 = vadd.f32 %v600_v31, %v583_v25  ;;  %v606_v57 = vadd.f32 %v600_v31, %v587_v52  ;;  %v607_v63 = vadd.f32 %v600_v31, %v591_v27  ;;  %v608_v6 = vadd.f32 %v600_v31, %v595_v1 }
 0x38e   :  { %v609_v36 = vmul.f32 0.2, %v601_v33  ;;  %v610_v38 = vmul.f32 0.2, %v602_v34  ;;  %v611_v42 = vmul.f32 0.2, %v603_v35 }
 0x38f   :  { %v612_v49 = vmul.f32 0.2, %v604_v43  ;;  %v613_v56 = vmul.f32 0.2, %v605_v50  ;;  %v614_v62 = vmul.f32 0.2, %v606_v57 }
 0x390   :  { %v617_v40 = vmax.f32 %v601_v33, %v609_v36  ;;  %v618_v41 = vmax.f32 %v602_v34, %v610_v38  ;;  %v619_v48 = vmax.f32 %v603_v35, %v611_v42  ;;  %v615_v5 = vmul.f32 0.2, %v607_v63 }
 0x391   :  { %v620_v55 = vmax.f32 %v604_v43, %v612_v49  ;;  %v621_v61 = vmax.f32 %v605_v50, %v613_v56  ;;  %v622_v4 = vmax.f32 %v606_v57, %v614_v62  ;;  %v616_v11 = vmul.f32 0.2, %v608_v6 }
 0x392   :  { %v633_v44 = vsel %vm625_vm1, %v617_v40, -1e+30  ;;  %v634_v47 = vsel %vm626_vm3, %v618_v41, -1e+30  ;;  %v635_v54 = vsel %vm627_vm4, %v619_v48, -1e+30  ;;  %v623_v10 = vmax.f32 %v607_v63, %v615_v5 }
 0x393   :  { %v642_v46 = vsel %vm641_vm2, %v633_v44, -inf  ;;  %v645_v53 = vsel %vm641_vm2, %v634_v47, -inf  ;;  %v648_v59 = vsel %vm641_vm2, %v635_v54, -inf  ;;  %v636_v60 = vsel %vm628_vm5, %v620_v55, -1e+30 }
 0x394   :  { %643 = vmax.xlane.f32.xlu0 %v642_v46  ;;  %v651_v2 = vsel %vm641_vm2, %v636_v60, -inf  ;;  %v637_v3 = vsel %vm629_vm6, %v621_v61, -1e+30  ;;  %v638_v9 = vsel %vm630_vm7, %v622_v4, -1e+30  ;;  %v624_v15 = vmax.f32 %v608_v6, %v616_v11 }
 0x395   :  { %v654_v8 = vsel %vm641_vm2, %v637_v3, -inf  ;;  %v657_v13 = vsel %vm641_vm2, %v638_v9, -inf  ;;  %v639_v14 = vsel %vm631_vm8, %v623_v10, -1e+30 }
 0x396   :  { %v660_v16 = vsel %vm641_vm2, %v639_v14, -inf  ;;  %v640_v17 = vsel %vm632_vm9, %v624_v15, -1e+30 }
 0x397   :  { %v663_v18 = vsel %vm641_vm2, %v640_v17, -inf }
 0x398   :  { %646 = vmax.xlane.f32.xlu0 %v645_v53 }
 0x39c   :  { %649 = vmax.xlane.f32.xlu0 %v648_v59 }
 0x3a0   :  { %652 = vmax.xlane.f32.xlu0 %v651_v2 }
 0x3a4   :  { %655 = vmax.xlane.f32.xlu0 %v654_v8 }
 0x3a8   :  { %658 = vmax.xlane.f32.xlu0 %v657_v13 }
 0x3ac   :  { %661 = vmax.xlane.f32.xlu0 %v660_v16 }
 0x3b0   :  { %664 = vmax.xlane.f32.xlu0 %v663_v18 }
 0x41d   :  { %v644_v19 = vpop.xlane.xlu0 %643 }
 0x41e   :  { %v666_v20 = vsub.f32 %v633_v44, %v644_v19 }
 0x420   :  { %v674_v21 = vmul.f32 1.442695, %v666_v20 }
 0x421   :  { %v647_v22 = vpop.xlane.xlu0 %646 }
 0x422   :  { %2055 = vpow2.f32 %v674_v21  ;;  %v667_v23 = vsub.f32 %v634_v47, %v647_v22  ;;  %v37_v21 = vld [vmem:[%s2584_s0 + $0x80] sm:$0xff]  ;;  %v16_v22 = vld [vmem:[%s2583_s1 + $0x28] sm:$0xff] }
 0x423   :  { %1943 = vmatprep.mubr.msk.f32.mxu0 %vm641_vm2, %v37_v21  ;;  %1971 = vmatprep.subr.mxu1 %v16_v22 }
 0x424   :  { %v676_v24 = vmul.f32 1.442695, %v667_v23  ;;  %v15_v23 = vld [vmem:[%s2583_s1 + $0x20] sm:$0xff] }
 0x425   :  { %v650_v25 = vpop.xlane.xlu0 %649 }
 0x426   :  { %2057 = vpow2.f32 %v676_v24  ;;  %v668_v27 = vsub.f32 %v635_v54, %v650_v25 }
 0x428   :  { %v678_v29 = vmul.f32 1.442695, %v668_v27 }
 0x429   :  { %v653_v30 = vpop.xlane.xlu0 %652 }
 0x42a   :  { %2059 = vpow2.f32 %v678_v29  ;;  %v669_v31 = vsub.f32 %v636_v60, %v653_v30 }
 0x42c   :  { %v680_v32 = vmul.f32 1.442695, %v669_v31 }
 0x42d   :  { %v656_v33 = vpop.xlane.xlu0 %655 }
 0x42e   :  { %2061 = vpow2.f32 %v680_v32  ;;  %v670_v34 = vsub.f32 %v637_v3, %v656_v33  ;;  %v1683_v32 = vld [vmem:[%s2583_s1 + $0x39] ss:$0 sm:$0xff] }
 0x42f   :  { %v2056_v35 = vpop.eup %2055 }
 0x430   :  { %v682_v36 = vmul.f32 1.442695, %v670_v34  ;;  %v690_v37 = vsel %vm641_vm2, %v2056_v35, 0.0 }
 0x431   :  { %691 = vadd.xlane.f32.xlu0 %v690_v37  ;;  %v659_v38 = vpop.xlane.xlu0 %658 }
 0x432   :  { %2063 = vpow2.f32 %v682_v36  ;;  %v671_v39 = vsub.f32 %v638_v9, %v659_v38 }
 0x433   :  { %v2058_v40 = vpop.eup %2057 }
 0x434   :  { %v684_v41 = vmul.f32 1.442695, %v671_v39  ;;  %v693_v42 = vsel %vm641_vm2, %v2058_v40, 0.0 }
 0x435   :  { %694 = vadd.xlane.f32.xlu0 %v693_v42  ;;  %v662_v43 = vpop.xlane.xlu0 %661 }
 0x436   :  { %2065 = vpow2.f32 %v684_v41  ;;  %v672_v44 = vsub.f32 %v639_v14, %v662_v43  ;;  %v38_v43 = vld [vmem:[%s2584_s0 + $0x88] sm:$0xff] }
 0x437   :  { %v2060_v45 = vpop.eup %2059 }
 0x438   :  { %v686_v46 = vmul.f32 1.442695, %v672_v44  ;;  %v696_v47 = vsel %vm641_vm2, %v2060_v45, 0.0  ;;  %v39_v44 = vld [vmem:[%s2584_s0 + $0x90] sm:$0xff] }
 0x439   :  { %697 = vadd.xlane.f32.xlu1 %v696_v47  ;;  %v665_v48 = vpop.xlane.xlu0 %664  ;;  %v42_v47 = vld [vmem:[%s2584_s0 + $0xa8] sm:$0xff] }
 0x43a   :  { %2067 = vpow2.f32 %v686_v46  ;;  %v673_v49 = vsub.f32 %v640_v17, %v665_v48  ;;  %v41_v46 = vld [vmem:[%s2584_s0 + $0xa0] sm:$0xff]  ;;  %v43_v48 = vld [vmem:[%s2584_s0 + $0xb0] sm:$0xff] }
 0x43b   :  { %v2062_v50 = vpop.eup %2061 }
 0x43c   :  { %v688_v51 = vmul.f32 1.442695, %v673_v49  ;;  %v699_v52 = vsel %vm641_vm2, %v2062_v50, 0.0  ;;  %v44_v49 = vld [vmem:[%s2584_s0 + $0xb8] sm:$0xff] }
 0x43d   :  { %700 = vadd.xlane.f32.xlu0 %v699_v52 }
 0x43e   :  { %2069 = vpow2.f32 %v688_v51 }
 0x43f   :  { %v2064_v53 = vpop.eup %2063 }
 0x440   :  { %v702_v54 = vsel %vm641_vm2, %v2064_v53, 0.0 }
 0x441   :  { %703 = vadd.xlane.f32.xlu0 %v702_v54 }
 0x443   :  { %v2066_v55 = vpop.eup %2065 }
 0x444   :  { %v705_v56 = vsel %vm641_vm2, %v2066_v55, 0.0 }
 0x445   :  { %706 = vadd.xlane.f32.xlu0 %v705_v56 }
 0x447   :  { %v2068_v57 = vpop.eup %2067 }
 0x448   :  { %v708_v58 = vsel %vm641_vm2, %v2068_v57, 0.0 }
 0x449   :  { %709 = vadd.xlane.f32.xlu0 %v708_v58  ;;  %v2396_v58 = vld [vmem:[%s2583_s1 + $0x3a] ss:$0 sm:$0xff] }
 0x44b   :  { %v2070_v59 = vpop.eup %2069 }
 0x44c   :  { %v711_v60 = vsel %vm641_vm2, %v2070_v59, 0.0 }
 0x44d   :  { %712 = vadd.xlane.f32.xlu0 %v711_v60 }
 0x4ba   :  { %v692_v61 = vpop.xlane.xlu0 %691 }
 0x4bb   :  { %2071 = vrcp.f32 %v692_v61 }
 0x4be   :  { %v695_v62 = vpop.xlane.xlu0 %694 }
 0x4bf   :  { %2073 = vrcp.f32 %v695_v62 }
 0x4c2   :  { %v698_v63 = vpop.xlane.xlu1 %697 }
 0x4c3   :  { %2075 = vrcp.f32 %v698_v63 }
 0x4c6   :  { %v701_v0 = vpop.xlane.xlu0 %700 }
 0x4c7   :  { %2077 = vrcp.f32 %v701_v0 }
 0x4c8   :  { %v2072_v1 = vpop.eup %2071 }
 0x4c9   :  { %v722_v2 = vmul.f32 %v2072_v1, %v2056_v35 }
 0x4ca   :  { %v704_v3 = vpop.xlane.xlu0 %703 }
 0x4cb   :  { %2079 = vrcp.f32 %v704_v3  ;;  %1915 = vmatprep.mubr.msk.f32.mxu1 %vm641_vm2, %v722_v2 }
 0x4cc   :  { %v2074_v4 = vpop.eup %2073 }
 0x4cd   :  { %v723_v5 = vmul.f32 %v2074_v4, %v2058_v40 }
 0x4ce   :  { %v707_v6 = vpop.xlane.xlu0 %706 }
 0x4cf   :  { %2081 = vrcp.f32 %v707_v6  ;;  %1916 = vmatmul.mubr.msk.f32.vlgmr.msra.gmra.mxu1 %vm641_vm2, %v723_v5 }
 0x4d0   :  { %v2076_v7 = vpop.eup %2075  ;;  %1973 = vmatpush3.msra.mxu1 %v16_v22 }
 0x4d1   :  { %v724_v8 = vmul.f32 %v2076_v7, %v2060_v45  ;;  %1972 = vmatprep.subr.mxu1 %v15_v23  ;;  %v40_v45 = vld [vmem:[%s2584_s0 + $0x98] sm:$0xff] }
 0x4d2   :  { %v710_v9 = vpop.xlane.xlu0 %709  ;;  %1974 = vmatpush3.msra.mxu1 %v15_v23 }
 0x4d3   :  { %2083 = vrcp.f32 %v710_v9  ;;  %1918 = vmatprep.mubr.msk.f32.mxu1 %vm641_vm2, %v724_v8 }
 0x4d4   :  { %v2078_v10 = vpop.eup %2077 }
 0x4d5   :  { %v725_v11 = vmul.f32 %v2078_v10, %v2062_v50 }
 0x4d6   :  { %v713_v12 = vpop.xlane.xlu0 %712 }
 0x4d7   :  { %2085 = vrcp.f32 %v713_v12  ;;  %1919 = vmatmul.mubr.msk.f32.gmra.mxu1 %vm641_vm2, %v725_v11 }
 0x4d8   :  { %v2080_v13 = vpop.eup %2079 }
 0x4d9   :  { %v726_v14 = vmul.f32 %v2080_v13, %v2064_v53 }
 0x4db   :  { %1921 = vmatprep.mubr.msk.f32.mxu1 %vm641_vm2, %v726_v14 }
 0x4dc   :  { %v2082_v15 = vpop.eup %2081 }
 0x4dd   :  { %v727_v16 = vmul.f32 %v2082_v15, %v2066_v55 }
 0x4df   :  { %1922 = vmatmul.mubr.msk.f32.gmra.mxu1 %vm641_vm2, %v727_v16 }
 0x4e0   :  { %v2084_v17 = vpop.eup %2083 }
 0x4e1   :  { %v728_v18 = vmul.f32 %v2084_v17, %v2068_v57 }
 0x4e3   :  { %1924 = vmatprep.mubr.msk.f32.mxu1 %vm641_vm2, %v728_v18 }
 0x4e4   :  { %v2086_v19 = vpop.eup %2085 }
 0x4e5   :  { %v729_v20 = vmul.f32 %v2086_v19, %v2070_v59  ;;  %v2155_v19 = vmov 24  }
 0x4e6   :  { %1992 = vset.pattern.permute.xlu0 %v2155_v19 }
 0x4e7   :  { %1925 = vmatmul.mubr.msk.f32.gmra.mxu1 %vm641_vm2, %v729_v20  ;;  %v2156_v20 = vmov 25  }
 0x4e8   :  { %1993 = vset.pattern.permute.xlu1 %v2156_v20 }
 0x58f   :  { %v1917_v24 = vpop.f32.mrf.mxu1 }
 0x590   :  { %v830_v41 = vadd.f32 %v1917_v24, %v1683_v32 }
 0x591   :  { %v824_v25 = vpop.f32.mrf.mxu1 }
 0x592   :  { %v825_v42 = vadd.f32 %v1683_v32, %v824_v25 }
 0x597   :  { %v1920_v27 = vpop.f32.mrf.mxu1 }
 0x598   :  { %v840_v39 = vadd.f32 %v1920_v27, %v1683_v32  ;;  %v2158_v27 = vmov 26  }
 0x599   :  { %v834_v29 = vpop.f32.mrf.mxu1 }
 0x59a   :  { %v835_v40 = vadd.f32 %v1683_v32, %v834_v29  ;;  %v2159_v29 = vmov 27  }
 0x59f   :  { %v1923_v30 = vpop.f32.mrf.mxu1 }
 0x5a0   :  { %v850_v37 = vadd.f32 %v1923_v30, %v1683_v32 }
 0x5a1   :  { %v844_v31 = vpop.f32.mrf.mxu1 }
 0x5a2   :  { %v845_v38 = vadd.f32 %v1683_v32, %v844_v31  ;;  %v2160_v31 = vmov 28  }
 0x5a7   :  { %v1926_v33 = vpop.f32.mrf.mxu1 }
 0x5a8   :  { %v860_v34 = vadd.f32 %v1926_v33, %v1683_v32  ;;  %v2162_v33 = vmov 30  }
 0x5a9   :  { %v854_v35 = vpop.f32.mrf.mxu1 }
 0x5aa   :  { %v855_v36 = vadd.f32 %v1683_v32, %v854_v35  ;;  %1927 = vmatprep.subr.mxu0 %v860_v34  ;;  %v2161_v32 = vmov 29  }
 0x5ab   :  { %1928 = vmatpush3.msra.mxu0 %v860_v34  ;;  %v2163_v34 = vmov 31  }
 0x5ac   :  { %1929 = vmatprep.subr.mxu0 %v855_v36 }
 0x5ad   :  { %1930 = vmatpush3.msra.mxu0 %v855_v36 }
 0x5ae   :  { %1931 = vmatprep.subr.mxu0 %v850_v37 }
 0x5af   :  { %1932 = vmatpush3.msra.mxu0 %v850_v37 }
 0x5b0   :  { %1933 = vmatprep.subr.mxu0 %v845_v38 }
 0x5b1   :  { %1934 = vmatpush3.msra.mxu0 %v845_v38 }
 0x5b2   :  { %1935 = vmatprep.subr.mxu0 %v840_v39 }
 0x5b3   :  { %1936 = vmatpush3.msra.mxu0 %v840_v39 }
 0x5b4   :  { %1937 = vmatprep.subr.mxu0 %v835_v40 }
 0x5b5   :  { %1938 = vmatpush3.msra.mxu0 %v835_v40  ;;  %v1199_v40 = vsub.s32 1, %v2291_v26 }
 0x5b6   :  { %1939 = vmatprep.subr.mxu0 %v830_v41 }
 0x5b7   :  { %1940 = vmatpush3.msra.mxu0 %v830_v41 }
 0x5b8   :  { %1941 = vmatprep.subr.mxu0 %v825_v42 }
 0x5b9   :  { %1942 = vmatpush3.msra.mxu0 %v825_v42  ;;  %v17_v42 = vld [vmem:[%s2583_s1 + $0x30] sm:$0xff]  ;;  %s2164_s1 = smov 104  }
 0x5ba   :  { %1944 = vmatmul.mubr.msk.f32.vlgmr.msra.gmra.mxu0 %vm641_vm2, %v38_v43  ;;  %1955 = vmatprep.subr.mxu0 %v16_v22 }
 0x5bb   :  { %1946 = vmatprep.mubr.msk.f32.mxu0 %vm641_vm2, %v39_v44  ;;  %1956 = vmatpush3.msra.mxu0 %v16_v22  ;;  %v2435_v44 = vrot.slane %v17_v42, %v599_v28  ;;  %v1247_v28 = vsub.s32 4, %v2291_v26 }
 0x5bc   :  { %1957 = vmatprep.subr.mxu0 %v15_v23 }
 0x5bd   :  { %1958 = vmatpush3.msra.mxu0 %v15_v23 }
 0x5be   :  { %1947 = vmatmul.mubr.msk.f32.gmra.mxu0 %vm641_vm2, %v40_v45  ;;  %v2437_v45 = vrot.slane %v17_v42, %v1199_v40 }
 0x5bf   :  { %1949 = vmatprep.mubr.msk.f32.mxu0 %vm641_vm2, %v41_v46  ;;  %v1215_v46 = vsub.s32 2, %v2291_v26 }
 0x5c2   :  { %1950 = vmatmul.mubr.msk.f32.gmra.mxu0 %vm641_vm2, %v42_v47 }
 0x5c3   :  { %1952 = vmatprep.mubr.msk.f32.mxu0 %vm641_vm2, %v43_v48  ;;  %v1231_v48 = vsub.s32 3, %v2291_v26 }
 0x5c6   :  { %1953 = vmatmul.mubr.msk.f32.gmra.mxu0 %vm641_vm2, %v44_v49 }
 0x67a   :  { %v1945_v50 = vpop.f32.mrf.mxu0 }
 0x67c   :  { %v953_v51 = vpop.f32.mrf.mxu0 }
 0x67d   :  { %1959 = vmatprep.mubr.msk.f32.mxu0 %vm61_vm0, %v953_v51 }
 0x67e   :  { %1960 = vmatmul.mubr.msk.f32.vlgmr.msra.gmra.mxu0 %vm61_vm0, %v1945_v50  ;;  %v1948_v52 = vpop.f32.mrf.mxu0 }
 0x680   :  { %v963_v53 = vpop.f32.mrf.mxu0 }
 0x681   :  { %1962 = vmatprep.mubr.msk.f32.mxu1 %vm61_vm0, %v963_v53 }
 0x682   :  { %v1951_v54 = vpop.f32.mrf.mxu0  ;;  %1963 = vmatmul.mubr.msk.f32.vlgmr.msra.gmra.mxu1 %vm61_vm0, %v1948_v52  ;;  %v2443_v52 = vrot.slane %v17_v42, %v1215_v46 }
 0x684   :  { %v973_v55 = vpop.f32.mrf.mxu0 }
 0x685   :  { %1965 = vmatprep.mubr.msk.f32.mxu1 %vm61_vm0, %v973_v55 }
 0x686   :  { %v1954_v56 = vpop.f32.mrf.mxu0  ;;  %1966 = vmatmul.mubr.msk.f32.gmra.mxu1 %vm61_vm0, %v1951_v54  ;;  %v2445_v54 = vrot.slane %v17_v42, %v1231_v48 }
 0x688   :  { %v983_v57 = vpop.f32.mrf.mxu0 }
 0x689   :  { %1968 = vmatprep.mubr.msk.f32.mxu1 %vm61_vm0, %v983_v57  ;;  %v1263_v57 = vsub.s32 5, %v2291_v26 }
 0x68a   :  { %1969 = vmatmul.mubr.msk.f32.gmra.mxu1 %vm61_vm0, %v1954_v56 }
 0x73e   :  { %v1961_v59 = vpop.f32.mrf.mxu0 }
 0x73f   :  { %v1092_v60 = vadd.f32 %v1961_v59, %v2396_v58 }
 0x740   :  { %v1086_v61 = vpop.f32.mrf.mxu0 }
 0x741   :  { %2087 = vtanh.f32 %v1092_v60  ;;  %v1087_v62 = vadd.f32 %v2396_v58, %v1086_v61  ;;  %v1710_v2 = vmul.f32 -1.442695, %v1092_v60 }
 0x743   :  { %2089 = vtanh.f32 %v1087_v62  ;;  %v1709_v1 = vmul.f32 -1.442695, %v1087_v62 }
 0x745   :  { %2091 = vpow2.f32 %v1709_v1  ;;  %v2456_v1 = vrot.slane %v17_v42, %v1263_v57 }
 0x746   :  { %2093 = vpow2.f32 %v1710_v2 }
 0x74e   :  { %v2088_v63 = vpop.eup %2087 }
 0x74f   :  { %1145 = vrot.lane.b32.xlu1 %v2088_v63, %s2153_s23 }
 0x750   :  { %v2090_v0 = vpop.eup %2089 }
 0x751   :  { %1143 = vrot.lane.b32.xlu0 %v2090_v0, %s2153_s23  ;;  %v2454_v0 = vrot.slane %v17_v42, %v1247_v28 }
 0x752   :  { %v2092_v3 = vpop.eup %2091 }
 0x753   :  { %v1131_v4 = vadd.f32 1.0, %v2092_v3  ;;  %v2094_v5 = vpop.eup %2093 }
 0x754   :  { %v1132_v6 = vadd.f32 1.0, %v2094_v5 }
 0x755   :  { %2095 = vrcp.f32 %v1131_v4  ;;  %v1279_v4 = vsub.s32 6, %v2291_v26 }
 0x756   :  { %2097 = vrcp.f32 %v1132_v6 }
 0x762   :  { %v2096_v7 = vpop.eup %2095 }
 0x763   :  { %v2098_v11 = vpop.eup %2097  ;;  %v1139_v13 = vmul.f32 0.0, %v2096_v7 }
 0x764   :  { %v1140_v16 = vmul.f32 0.0, %v2098_v11 }
 0x7c1   :  { %v1146_v10 = vpop.permute.xlu1 %1145 }
 0x7c2   :  { %v1150_v12 = vmul.f32 %v2098_v11, %v1146_v10 }
 0x7c3   :  { %v1144_v8 = vpop.permute.xlu0 %1143 }
 0x7c4   :  { %v1149_v9 = vmul.f32 %v2096_v7, %v1144_v8  ;;  %v1295_v8 = vsub.s32 7, %v2291_v26 }
 0x7c6   :  { %1153 = vrot.lane.b32.xlu0 %v1149_v9, %s2154_s24 }
 0x7ca   :  { %1155 = vrot.lane.b32.xlu0 %v1150_v12, %s2154_s24 }
 0x838   :  { %v1154_v14 = vpop.permute.xlu0 %1153 }
 0x839   :  { %v2404_v15 = vadd.f32 %v1154_v14, %v1139_v13  ;;  %v2463_v13 = vrot.slane %v17_v42, %v1279_v4 }
 0x83b   :  { %2099 = vtanh.f32 %v2404_v15 }
 0x83c   :  { %v1156_v17 = vpop.permute.xlu0 %1155 }
 0x83d   :  { %v2407_v18 = vadd.f32 %v1156_v17, %v1140_v16  ;;  %v1964_v16 = vpop.f32.mrf.mxu1  ;;  %v2465_v17 = vrot.slane %v17_v42, %v1295_v8 }
 0x83f   :  { %2101 = vtanh.f32 %v2407_v18 }
 0x848   :  { %v2100_v21 = vpop.eup %2099 }
 0x849   :  { %1165 = vrot.lane.b32.xlu0 %v2100_v21, %s2157_s25 }
 0x84c   :  { %v2102_v22 = vpop.eup %2101 }
 0x84d   :  { %1167 = vrot.lane.b32.xlu0 %v2102_v22, %s2157_s25 }
 0x8bb   :  { %v1166_v23 = vpop.permute.xlu0 %1165 }
 0x8bc   :  { %v1171_v30 = vmul.f32 %v2096_v7, %v1166_v23 }
 0x8bf   :  { %v1168_v24 = vpop.permute.xlu0 %1167 }
 0x8c0   :  { %v1172_v25 = vmul.f32 %v2098_v11, %v1168_v24 }
 0x8c2   :  { %1194 = vperm.xlu1 %1993, %v1172_v25   ;;  %1180 = vperm.xlu0 %1992, %v1172_v25  }
 0x8c6   :  { %1994 = vset.pattern.permute.xlu1 %v2158_v27  ;;  %1995 = vset.pattern.permute.xlu0 %v2159_v29 }
 0x8c7   :  { %1210 = vperm.xlu1 %1994, %v1172_v25   ;;  %1226 = vperm.xlu0 %1995, %v1172_v25  }
 0x8cb   :  { %1996 = vset.pattern.permute.xlu1 %v2160_v31  ;;  %2000 = vset.pattern.permute.xlu0 %v2158_v27 }
 0x8cc   :  { %1242 = vperm.xlu1 %1996, %v1172_v25   ;;  %1206 = vperm.xlu0 %2000, %v1171_v30  }
 0x8d0   :  { %1997 = vset.pattern.permute.xlu1 %v2161_v32  ;;  %2003 = vset.pattern.permute.xlu0 %v2161_v32 }
 0x8d1   :  { %1258 = vperm.xlu1 %1997, %v1172_v25   ;;  %1254 = vperm.xlu0 %2003, %v1171_v30  }
 0x8d5   :  { %1998 = vset.pattern.permute.xlu1 %v2155_v19  ;;  %2004 = vset.pattern.permute.xlu0 %v2162_v33 }
 0x8d6   :  { %1175 = vperm.xlu1 %1998, %v1171_v30   ;;  %1274 = vperm.xlu0 %2004, %v1172_v25  }
 0x8da   :  { %1999 = vset.pattern.permute.xlu1 %v2156_v20  ;;  %2008 = vset.pattern.permute.xlu0 %v2156_v20 }
 0x8db   :  { %1190 = vperm.xlu1 %1999, %v1171_v30  }
 0x8df   :  { %2001 = vset.pattern.permute.xlu1 %v2159_v29 }
 0x8e0   :  { %1222 = vperm.xlu1 %2001, %v1171_v30  }
 0x8e4   :  { %2002 = vset.pattern.permute.xlu1 %v2160_v31 }
 0x8e5   :  { %1238 = vperm.xlu1 %2002, %v1171_v30  }
 0x8e9   :  { %2005 = vset.pattern.permute.xlu1 %v2162_v33 }
 0x8ea   :  { %1270 = vperm.xlu1 %2005, %v1171_v30  }
 0x8ee   :  { %2006 = vset.pattern.permute.xlu1 %v2163_v34 }
 0x8ef   :  { %1286 = vperm.xlu1 %2006, %v1171_v30   ;;  %v1096_v30 = vpop.f32.mrf.mxu1 }
 0x8f0   :  { %v1097_v42 = vadd.f32 %v2396_v58, %v1096_v30 }
 0x8f3   :  { %1290 = vperm.xlu1 %2006, %v1172_v25  }
 0x8f7   :  { %2007 = vset.pattern.permute.xlu1 %v2155_v19 }
 0x93d   :  { %v1195_v35 = vpop.permute.xlu1 %1194  ;;  %v1181_v38 = vpop.permute.xlu0 %1180 }
 0x93e   :  { %v1202_v59 = vmul.f32 %v2437_v45, %v1195_v35  ;;  %v1188_v60 = vmul.f32 %v2435_v44, %v1181_v38 }
 0x940   :  { %v1204_v3 = vadd.f32 %v1202_v59, %v1188_v60 }
 0x942   :  { %v1211_v36 = vpop.permute.xlu1 %1210  ;;  %v1227_v43 = vpop.permute.xlu0 %1226 }
 0x943   :  { %v1218_v63 = vmul.f32 %v2443_v52, %v1211_v36  ;;  %v1234_v11 = vmul.f32 %v2445_v54, %v1227_v43 }
 0x945   :  { %v1220_v9 = vadd.f32 %v1218_v63, %v1204_v3 }
 0x947   :  { %v1243_v37 = vpop.permute.xlu1 %1242  ;;  %v1207_v51 = vpop.permute.xlu0 %1206  ;;  %v1236_v21 = vadd.f32 %v1234_v11, %v1220_v9 }
 0x948   :  { %v1217_v55 = vmul.f32 %v2443_v52, %v1207_v51  ;;  %v1250_v22 = vmul.f32 %v2454_v0, %v1243_v37 }
 0x94a   :  { %v1252_v36 = vadd.f32 %v1250_v22, %v1236_v21 }
 0x94c   :  { %v1259_v39 = vpop.permute.xlu1 %1258  ;;  %v1255_v7 = vpop.permute.xlu0 %1254 }
 0x94d   :  { %v1265_v12 = vmul.f32 %v2456_v1, %v1255_v7  ;;  %v1266_v26 = vmul.f32 %v2456_v1, %v1259_v39 }
 0x94f   :  { %v1268_v43 = vadd.f32 %v1266_v26, %v1252_v36 }
 0x951   :  { %v1176_v41 = vpop.permute.xlu1 %1175  ;;  %v1275_v25 = vpop.permute.xlu0 %1274 }
 0x952   :  { %v1187_v49 = vmul.f32 %v2435_v44, %v1176_v41  ;;  %v1282_v38 = vmul.f32 %v2463_v13, %v1275_v25 }
 0x954   :  { %v1284_v37 = vadd.f32 %v1282_v38, %v1268_v43 }
 0x956   :  { %v1191_v47 = vpop.permute.xlu1 %1190 }
 0x957   :  { %v1201_v50 = vmul.f32 %v2437_v45, %v1191_v47 }
 0x959   :  { %v1203_v53 = vadd.f32 %v1201_v50, %v1187_v49  ;;  %v1102_v50 = vadd.f32 %v1964_v16, %v2396_v58 }
 0x95b   :  { %v1223_v56 = vpop.permute.xlu1 %1222  ;;  %v1219_v61 = vadd.f32 %v1217_v55, %v1203_v53 }
 0x95c   :  { %v1233_v62 = vmul.f32 %v2445_v54, %v1223_v56 }
 0x95e   :  { %v1235_v5 = vadd.f32 %v1233_v62, %v1219_v61 }
 0x960   :  { %v1239_v2 = vpop.permute.xlu1 %1238 }
 0x961   :  { %v1249_v6 = vmul.f32 %v2454_v0, %v1239_v2 }
 0x963   :  { %v1251_v10 = vadd.f32 %v1249_v6, %v1235_v5 }
 0x965   :  { %v1271_v14 = vpop.permute.xlu1 %1270  ;;  %v1267_v23 = vadd.f32 %v1265_v12, %v1251_v10 }
 0x966   :  { %v1281_v24 = vmul.f32 %v2463_v13, %v1271_v14 }
 0x968   :  { %v1283_v40 = vadd.f32 %v1281_v24, %v1267_v23 }
 0x96a   :  { %v1287_v35 = vpop.permute.xlu1 %1286 }
 0x96b   :  { %v1297_v41 = vmul.f32 %v2465_v17, %v1287_v35 }
 0x96d   :  { %v1299_v46 = vadd.f32 %v1297_v41, %v1283_v40 }
 0x96e   :  { %v1291_v47 = vpop.permute.xlu1 %1290 }
 0x96f   :  { %v1301_v48 = vadd.f32 %v1299_v46, %v1097_v42  ;;  %v1298_v49 = vmul.f32 %v2465_v17, %v1291_v47 }
 0x971   :  { %2103 = vtanh.f32 %v1301_v48  ;;  %v1300_v39 = vadd.f32 %v1298_v49, %v1284_v37  ;;  %v1711_v55 = vmul.f32 -1.442695, %v1301_v48 }
 0x973   :  { %v1302_v51 = vadd.f32 %v1300_v39, %v1102_v50 }
 0x975   :  { %2105 = vtanh.f32 %v1302_v51  ;;  %v1712_v56 = vmul.f32 -1.442695, %v1302_v51 }
 0x976   :  { %2107 = vpow2.f32 %v1711_v55 }
 0x977   :  { %2109 = vpow2.f32 %v1712_v56 }
 0x97e   :  { %v2104_v53 = vpop.eup %2103 }
 0x97f   :  { %1321 = vrot.lane.b32.xlu0 %v2104_v53, %s2153_s23 }
 0x982   :  { %v2106_v28 = vpop.eup %2105 }
 0x983   :  { %1323 = vrot.lane.b32.xlu1 %v2106_v28, %s2153_s23  ;;  %v2108_v57 = vpop.eup %2107 }
 0x984   :  { %v1309_v59 = vadd.f32 1.0, %v2108_v57  ;;  %v2110_v60 = vpop.eup %2109 }
 0x985   :  { %v1310_v61 = vadd.f32 1.0, %v2110_v60 }
 0x986   :  { %2111 = vrcp.f32 %v1309_v59 }
 0x987   :  { %2113 = vrcp.f32 %v1310_v61 }
 0x993   :  { %v2112_v62 = vpop.eup %2111 }
 0x994   :  { %v2114_v3 = vpop.eup %2113  ;;  %v1317_v6 = vmul.f32 %v2112_v62, %v2404_v15 }
 0x995   :  { %v1318_v9 = vmul.f32 %v2114_v3, %v2407_v18 }
 0x9f1   :  { %v1322_v63 = vpop.permute.xlu0 %1321 }
 0x9f2   :  { %v1327_v2 = vmul.f32 %v2112_v62, %v1322_v63 }
 0x9f4   :  { %1331 = vrot.lane.b32.xlu0 %v1327_v2, %s2154_s24 }
 0x9f5   :  { %v1324_v4 = vpop.permute.xlu1 %1323 }
 0x9f6   :  { %v1328_v5 = vmul.f32 %v2114_v3, %v1324_v4 }
 0x9f8   :  { %1333 = vrot.lane.b32.xlu1 %v1328_v5, %s2154_s24 }
 0xa66   :  { %v1332_v7 = vpop.permute.xlu0 %1331 }
 0xa67   :  { %v2480_v8 = vadd.f32 %v1332_v7, %v1317_v6 }
 0xa69   :  { %2115 = vtanh.f32 %v2480_v8 }
 0xa6a   :  { %v1334_v10 = vpop.permute.xlu1 %1333 }
 0xa6b   :  { %v2484_v11 = vadd.f32 %v1334_v10, %v1318_v9 }
 0xa6d   :  { %2117 = vtanh.f32 %v2484_v11 }
 0xa76   :  { %v2116_v12 = vpop.eup %2115 }
 0xa77   :  { %1343 = vrot.lane.b32.xlu0 %v2116_v12, %s2157_s25 }
 0xa7a   :  { %v2118_v14 = vpop.eup %2117 }
 0xa7b   :  { %1345 = vrot.lane.b32.xlu1 %v2118_v14, %s2157_s25 }
 0xae9   :  { %v1344_v18 = vpop.permute.xlu0 %1343 }
 0xaea   :  { %v1349_v21 = vmul.f32 %v2112_v62, %v1344_v18 }
 0xaed   :  { %v1346_v16 = vpop.permute.xlu1 %1345 }
 0xaee   :  { %v1350_v15 = vmul.f32 %v2114_v3, %v1346_v16  ;;  %v1967_v3 = vpop.f32.mrf.mxu1 }
 0xaf0   :  { %1358 = vperm.xlu1 %2007, %v1350_v15   ;;  %1368 = vperm.xlu0 %2008, %v1350_v15   ;;  %v1106_v16 = vpop.f32.mrf.mxu1 }
 0xaf4   :  { %2009 = vset.pattern.permute.xlu1 %v2158_v27  ;;  %2011 = vset.pattern.permute.xlu0 %v2160_v31 }
 0xaf5   :  { %1380 = vperm.xlu1 %2009, %v1350_v15   ;;  %1404 = vperm.xlu0 %2011, %v1350_v15  }
 0xaf9   :  { %2010 = vset.pattern.permute.xlu1 %v2159_v29  ;;  %2014 = vset.pattern.permute.xlu0 %v2155_v19 }
 0xafa   :  { %1392 = vperm.xlu1 %2010, %v1350_v15   ;;  %1353 = vperm.xlu0 %2014, %v1349_v21  }
 0xafe   :  { %2012 = vset.pattern.permute.xlu1 %v2161_v32  ;;  %2017 = vset.pattern.permute.xlu0 %v2159_v29 }
 0xaff   :  { %1416 = vperm.xlu1 %2012, %v1350_v15   ;;  %1388 = vperm.xlu0 %2017, %v1349_v21  }
 0xb03   :  { %2013 = vset.pattern.permute.xlu1 %v2162_v33  ;;  %2020 = vset.pattern.permute.xlu0 %v2162_v33 }
 0xb04   :  { %1428 = vperm.xlu1 %2013, %v1350_v15   ;;  %1424 = vperm.xlu0 %2020, %v1349_v21  }
 0xb08   :  { %2015 = vset.pattern.permute.xlu1 %v2156_v20  ;;  %2022 = vset.pattern.permute.xlu0 %v2163_v34 }
 0xb09   :  { %1364 = vperm.xlu1 %2015, %v1349_v21   ;;  %1440 = vperm.xlu0 %2022, %v1350_v15  }
 0xb0d   :  { %2016 = vset.pattern.permute.xlu1 %v2158_v27  ;;  %2024 = vset.pattern.permute.xlu0 %v2156_v20 }
 0xb0e   :  { %1376 = vperm.xlu1 %2016, %v1349_v21  }
 0xb12   :  { %2018 = vset.pattern.permute.xlu1 %v2160_v31 }
 0xb13   :  { %1400 = vperm.xlu1 %2018, %v1349_v21  }
 0xb17   :  { %2019 = vset.pattern.permute.xlu1 %v2161_v32 }
 0xb18   :  { %1412 = vperm.xlu1 %2019, %v1349_v21  }
 0xb1c   :  { %2021 = vset.pattern.permute.xlu1 %v2163_v34 }
 0xb1d   :  { %1436 = vperm.xlu1 %2021, %v1349_v21  }
 0xb21   :  { %2023 = vset.pattern.permute.xlu1 %v2155_v19 }
 0xb6b   :  { %v1359_v22 = vpop.permute.xlu1 %1358  ;;  %v1369_v25 = vpop.permute.xlu0 %1368 }
 0xb6c   :  { %v1362_v41 = vmul.f32 %v1359_v22, %v2435_v44  ;;  %v1372_v42 = vmul.f32 %v1369_v25, %v2437_v45 }
 0xb6e   :  { %v1374_v50 = vadd.f32 %v1372_v42, %v1362_v41 }
 0xb70   :  { %v1381_v23 = vpop.permute.xlu1 %1380  ;;  %v1405_v30 = vpop.permute.xlu0 %1404 }
 0xb71   :  { %v1384_v47 = vmul.f32 %v1381_v23, %v2443_v52  ;;  %v1408_v61 = vmul.f32 %v1405_v30, %v2454_v0  ;;  %v1107_v23 = vadd.f32 %v2396_v58, %v1106_v16 }
 0xb73   :  { %v1386_v53 = vadd.f32 %v1384_v47, %v1374_v50 }
 0xb75   :  { %v1393_v24 = vpop.permute.xlu1 %1392  ;;  %v1354_v36 = vpop.permute.xlu0 %1353 }
 0xb76   :  { %v1361_v43 = vmul.f32 %v1354_v36, %v2435_v44  ;;  %v1396_v39 = vmul.f32 %v1393_v24, %v2445_v54 }
 0xb78   :  { %v1398_v57 = vadd.f32 %v1396_v39, %v1386_v53 }
 0xb7a   :  { %v1417_v26 = vpop.permute.xlu1 %1416  ;;  %v1389_v46 = vpop.permute.xlu0 %1388  ;;  %v1410_v62 = vadd.f32 %v1408_v61, %v1398_v57 }
 0xb7b   :  { %v1395_v28 = vmul.f32 %v1389_v46, %v2445_v54  ;;  %v1420_v63 = vmul.f32 %v1417_v26, %v2456_v1  ;;  %v1112_v26 = vadd.f32 %v1967_v3, %v2396_v58 }
 0xb7d   :  { %v1422_v12 = vadd.f32 %v1420_v63, %v1410_v62 }
 0xb7f   :  { %v1429_v35 = vpop.permute.xlu1 %1428  ;;  %v1425_v55 = vpop.permute.xlu0 %1424 }
 0xb80   :  { %v1432_v7 = vmul.f32 %v1429_v35, %v2463_v13  ;;  %v1431_v9 = vmul.f32 %v1425_v55, %v2463_v13 }
 0xb82   :  { %v1434_v21 = vadd.f32 %v1432_v7, %v1422_v12 }
 0xb84   :  { %v1365_v38 = vpop.permute.xlu1 %1364  ;;  %v1441_v4 = vpop.permute.xlu0 %1440 }
 0xb85   :  { %v1371_v40 = vmul.f32 %v1365_v38, %v2437_v45  ;;  %v1444_v14 = vmul.f32 %v1441_v4, %v2465_v17 }
 0xb87   :  { %v1373_v48 = vadd.f32 %v1371_v40, %v1361_v43  ;;  %v1446_v24 = vadd.f32 %v1444_v14, %v1434_v21 }
 0xb89   :  { %v1377_v37 = vpop.permute.xlu1 %1376  ;;  %v1448_v35 = vadd.f32 %v1446_v24, %v1112_v26 }
 0xb8a   :  { %v1383_v49 = vmul.f32 %v1377_v37, %v2443_v52 }
 0xb8b   :  { %v1714_v41 = vmul.f32 -1.442695, %v1448_v35 }
 0xb8c   :  { %v1385_v51 = vadd.f32 %v1383_v49, %v1373_v48 }
 0xb8e   :  { %v1401_v56 = vpop.permute.xlu1 %1400  ;;  %v1397_v59 = vadd.f32 %v1395_v28, %v1385_v51 }
 0xb8f   :  { %v1407_v60 = vmul.f32 %v1401_v56, %v2454_v0 }
 0xb91   :  { %v1409_v5 = vadd.f32 %v1407_v60, %v1397_v59 }
 0xb93   :  { %v1413_v2 = vpop.permute.xlu1 %1412 }
 0xb94   :  { %v1419_v6 = vmul.f32 %v1413_v2, %v2456_v1 }
 0xb96   :  { %v1421_v10 = vadd.f32 %v1419_v6, %v1409_v5 }
 0xb98   :  { %v1437_v15 = vpop.permute.xlu1 %1436  ;;  %v1433_v18 = vadd.f32 %v1431_v9, %v1421_v10 }
 0xb99   :  { %v1443_v22 = vmul.f32 %v1437_v15, %v2465_v17 }
 0xb9b   :  { %v1445_v25 = vadd.f32 %v1443_v22, %v1433_v18 }
 0xb9d   :  { %v1447_v30 = vadd.f32 %v1445_v25, %v1107_v23 }
 0xb9f   :  { %2119 = vtanh.f32 %v1447_v30  ;;  %v1713_v40 = vmul.f32 -1.442695, %v1447_v30 }
 0xba0   :  { %2121 = vtanh.f32 %v1448_v35 }
 0xba1   :  { %2123 = vpow2.f32 %v1713_v40 }
 0xba2   :  { %2125 = vpow2.f32 %v1714_v41 }
 0xbac   :  { %v2120_v36 = vpop.eup %2119 }
 0xbad   :  { %1467 = vrot.lane.b32.xlu1 %v2120_v36, %s2153_s23  ;;  %v2122_v38 = vpop.eup %2121 }
 0xbae   :  { %v2124_v42 = vpop.eup %2123 }
 0xbaf   :  { %v1455_v43 = vadd.f32 1.0, %v2124_v42  ;;  %v2126_v46 = vpop.eup %2125 }
 0xbb0   :  { %v1456_v47 = vadd.f32 1.0, %v2126_v46 }
 0xbb1   :  { %1469 = vrot.lane.b32.xlu1 %v2122_v38, %s2153_s23  ;;  %2127 = vrcp.f32 %v1455_v43 }
 0xbb2   :  { %2129 = vrcp.f32 %v1456_v47 }
 0xbbe   :  { %v2128_v37 = vpop.eup %2127 }
 0xbbf   :  { %v2130_v50 = vpop.eup %2129  ;;  %v1463_v53 = vmul.f32 %v2128_v37, %v2480_v8 }
 0xbc0   :  { %v1464_v56 = vmul.f32 %v2130_v50, %v2484_v11 }
 0xc1f   :  { %v1468_v48 = vpop.permute.xlu1 %1467 }
 0xc20   :  { %v1473_v49 = vmul.f32 %v2128_v37, %v1468_v48 }
 0xc22   :  { %1477 = vrot.lane.b32.xlu0 %v1473_v49, %s2154_s24 }
 0xc23   :  { %v1470_v39 = vpop.permute.xlu1 %1469 }
 0xc24   :  { %v1474_v51 = vmul.f32 %v2130_v50, %v1470_v39 }
 0xc26   :  { %1479 = vrot.lane.b32.xlu1 %v1474_v51, %s2154_s24 }
 0xc94   :  { %v1478_v28 = vpop.permute.xlu0 %1477 }
 0xc95   :  { %v2528_v55 = vadd.f32 %v1478_v28, %v1463_v53 }
 0xc97   :  { %2131 = vtanh.f32 %v2528_v55 }
 0xc98   :  { %v1480_v57 = vpop.permute.xlu1 %1479 }
 0xc99   :  { %v2532_v59 = vadd.f32 %v1480_v57, %v1464_v56 }
 0xc9b   :  { %2133 = vtanh.f32 %v2532_v59 }
 0xca4   :  { %v2132_v60 = vpop.eup %2131 }
 0xca5   :  { %1489 = vrot.lane.b32.xlu0 %v2132_v60, %s2157_s25 }
 0xca8   :  { %v2134_v61 = vpop.eup %2133 }
 0xca9   :  { %1491 = vrot.lane.b32.xlu1 %v2134_v61, %s2157_s25 }
 0xd17   :  { %v1490_v11 = vpop.permute.xlu0 %1489 }
 0xd18   :  { %v1495_v63 = vmul.f32 %v2128_v37, %v1490_v11 }
 0xd1b   :  { %v1492_v62 = vpop.permute.xlu1 %1491 }
 0xd1c   :  { %v1496_v8 = vmul.f32 %v2130_v50, %v1492_v62 }
 0xd1e   :  { %1504 = vperm.xlu1 %2023, %v1496_v8   ;;  %1514 = vperm.xlu0 %2024, %v1496_v8  }
 0xd22   :  { %2025 = vset.pattern.permute.xlu1 %v2158_v27  ;;  %2027 = vset.pattern.permute.xlu0 %v2160_v31 }
 0xd23   :  { %1526 = vperm.xlu1 %2025, %v1496_v8   ;;  %1550 = vperm.xlu0 %2027, %v1496_v8  }
 0xd27   :  { %2026 = vset.pattern.permute.xlu1 %v2159_v29  ;;  %2030 = vset.pattern.permute.xlu0 %v2155_v19 }
 0xd28   :  { %1538 = vperm.xlu1 %2026, %v1496_v8   ;;  %1499 = vperm.xlu0 %2030, %v1495_v63  }
 0xd2c   :  { %2028 = vset.pattern.permute.xlu1 %v2161_v32  ;;  %2033 = vset.pattern.permute.xlu0 %v2159_v29 }
 0xd2d   :  { %1562 = vperm.xlu1 %2028, %v1496_v8   ;;  %1534 = vperm.xlu0 %2033, %v1495_v63  }
 0xd31   :  { %2029 = vset.pattern.permute.xlu1 %v2162_v33  ;;  %2036 = vset.pattern.permute.xlu0 %v2162_v33 }
 0xd32   :  { %1574 = vperm.xlu1 %2029, %v1496_v8   ;;  %1570 = vperm.xlu0 %2036, %v1495_v63  }
 0xd36   :  { %2031 = vset.pattern.permute.xlu1 %v2156_v20  ;;  %2038 = vset.pattern.permute.xlu0 %v2163_v34 }
 0xd37   :  { %1510 = vperm.xlu1 %2031, %v1495_v63   ;;  %1586 = vperm.xlu0 %2038, %v1496_v8  }
 0xd3b   :  { %2032 = vset.pattern.permute.xlu1 %v2158_v27 }
 0xd3c   :  { %1522 = vperm.xlu1 %2032, %v1495_v63  }
 0xd40   :  { %2034 = vset.pattern.permute.xlu1 %v2160_v31 }
 0xd41   :  { %1546 = vperm.xlu1 %2034, %v1495_v63  }
 0xd45   :  { %2035 = vset.pattern.permute.xlu1 %v2161_v32 }
 0xd46   :  { %1558 = vperm.xlu1 %2035, %v1495_v63  }
 0xd4a   :  { %2037 = vset.pattern.permute.xlu1 %v2163_v34 }
 0xd4b   :  { %1582 = vperm.xlu1 %2037, %v1495_v63  }
 0xd99   :  { %v1505_v19 = vpop.permute.xlu1 %1504  ;;  %v1515_v20 = vpop.permute.xlu0 %1514 }
 0xd9a   :  { %v1508_v31 = vmul.f32 %v1505_v19, %v2435_v44  ;;  %v1518_v7 = vmul.f32 %v1515_v20, %v2437_v45 }
 0xd9c   :  { %v1520_v16 = vadd.f32 %v1518_v7, %v1508_v31 }
 0xd9e   :  { %v1527_v29 = vpop.permute.xlu1 %1526  ;;  %v1551_v3 = vpop.permute.xlu0 %1550 }
 0xd9f   :  { %v1530_v34 = vmul.f32 %v1527_v29, %v2443_v52  ;;  %v1554_v26 = vmul.f32 %v1551_v3, %v2454_v0 }
 0xda1   :  { %v1532_v21 = vadd.f32 %v1530_v34, %v1520_v16 }
 0xda3   :  { %v1539_v33 = vpop.permute.xlu1 %1538  ;;  %v1500_v5 = vpop.permute.xlu0 %1499 }
 0xda4   :  { %v1507_v32 = vmul.f32 %v1500_v5, %v2435_v44  ;;  %v1542_v15 = vmul.f32 %v1539_v33, %v2445_v54 }
 0xda6   :  { %v1544_v25 = vadd.f32 %v1542_v15, %v1532_v21 }
 0xda8   :  { %v1563_v2 = vpop.permute.xlu1 %1562  ;;  %v1535_v9 = vpop.permute.xlu0 %1534  ;;  %v1556_v30 = vadd.f32 %v1554_v26, %v1544_v25 }
 0xda9   :  { %v1541_v22 = vmul.f32 %v1535_v9, %v2445_v54  ;;  %v1566_v35 = vmul.f32 %v1563_v2, %v2456_v1 }
 0xdab   :  { %v1568_v46 = vadd.f32 %v1566_v35, %v1556_v30 }
 0xdad   :  { %v1575_v4 = vpop.permute.xlu1 %1574  ;;  %v1571_v23 = vpop.permute.xlu0 %1570 }
 0xdae   :  { %v1578_v42 = vmul.f32 %v1575_v4, %v2463_v13  ;;  %v1577_v54 = vmul.f32 %v1571_v23, %v2463_v13 }
 0xdb0   :  { %v1580_v49 = vadd.f32 %v1578_v42, %v1568_v46 }
 0xdb2   :  { %v1511_v6 = vpop.permute.xlu1 %1510  ;;  %v1587_v38 = vpop.permute.xlu0 %1586 }
 0xdb3   :  { %v1517_v27 = vmul.f32 %v1511_v6, %v2437_v45  ;;  %v1590_v47 = vmul.f32 %v1587_v38, %v2465_v17 }
 0xdb5   :  { %v1519_v12 = vadd.f32 %v1517_v27, %v1507_v32  ;;  %v1592_v51 = vadd.f32 %v1590_v47, %v1580_v49 }
 0xdb7   :  { %v1523_v10 = vpop.permute.xlu1 %1522 }
 0xdb8   :  { %v1529_v14 = vmul.f32 %v1523_v10, %v2443_v52  ;;  %v1970_v52 = vpop.f32.mrf.mxu1 }
 0xdba   :  { %v1531_v18 = vadd.f32 %v1529_v14, %v1519_v12  ;;  %v1116_v37 = vpop.f32.mrf.mxu1 }
 0xdbb   :  { %v1117_v39 = vadd.f32 %v2396_v58, %v1116_v37 }
 0xdbc   :  { %v1547_v24 = vpop.permute.xlu1 %1546  ;;  %v1543_v45 = vadd.f32 %v1541_v22, %v1531_v18 }
 0xdbd   :  { %v1553_v44 = vmul.f32 %v1547_v24, %v2454_v0 }
 0xdbf   :  { %v1555_v40 = vadd.f32 %v1553_v44, %v1543_v45 }
 0xdc1   :  { %v1559_v36 = vpop.permute.xlu1 %1558 }
 0xdc2   :  { %v1565_v41 = vmul.f32 %v1559_v36, %v2456_v1  ;;  %v1122_v1 = vadd.f32 %v1970_v52, %v2396_v58 }
 0xdc4   :  { %v1567_v43 = vadd.f32 %v1565_v41, %v1555_v40  ;;  %v1594_v56 = vadd.f32 %v1592_v51, %v1122_v1 }
 0xdc6   :  { %v1583_v48 = vpop.permute.xlu1 %1582  ;;  %v1579_v0 = vadd.f32 %v1577_v54, %v1567_v43  ;;  %v1716_v61 = vmul.f32 -1.442695, %v1594_v56 }
 0xdc7   :  { %v1589_v50 = vmul.f32 %v1583_v48, %v2465_v17 }
 0xdc9   :  { %v1591_v53 = vadd.f32 %v1589_v50, %v1579_v0 }
 0xdcb   :  { %v1593_v28 = vadd.f32 %v1591_v53, %v1117_v39 }
 0xdcd   :  { %2135 = vtanh.f32 %v1593_v28  ;;  %v1715_v60 = vmul.f32 -1.442695, %v1593_v28 }
 0xdce   :  { %2137 = vtanh.f32 %v1594_v56 }
 0xdcf   :  { %2139 = vpow2.f32 %v1715_v60 }
 0xdd0   :  { %2141 = vpow2.f32 %v1716_v61 }
 0xdda   :  { %v2136_v13 = vpop.eup %2135 }
 0xddb   :  { %1613 = vrot.lane.b32.xlu1 %v2136_v13, %s2153_s23  ;;  %v2138_v57 = vpop.eup %2137 }
 0xddc   :  { %v2140_v17 = vpop.eup %2139 }
 0xddd   :  { %v1601_v62 = vadd.f32 1.0, %v2140_v17  ;;  %v2142_v8 = vpop.eup %2141 }
 0xdde   :  { %v1602_v11 = vadd.f32 1.0, %v2142_v8 }
 0xddf   :  { %1615 = vrot.lane.b32.xlu1 %v2138_v57, %s2153_s23  ;;  %2143 = vrcp.f32 %v1601_v62 }
 0xde0   :  { %2145 = vrcp.f32 %v1602_v11 }
 0xdec   :  { %v2144_v58 = vpop.eup %2143 }
 0xded   :  { %v2146_v29 = vpop.eup %2145  ;;  %v1609_v2 = vmul.f32 %v2144_v58, %v2528_v55 }
 0xdee   :  { %v1610_v5 = vmul.f32 %v2146_v29, %v2532_v59 }
 0xe4d   :  { %v1614_v63 = vpop.permute.xlu1 %1613 }
 0xe4e   :  { %v1619_v19 = vmul.f32 %v2144_v58, %v1614_v63 }
 0xe50   :  { %1623 = vrot.lane.b32.xlu0 %v1619_v19, %s2154_s24 }
 0xe51   :  { %v1616_v33 = vpop.permute.xlu1 %1615 }
 0xe52   :  { %v1620_v20 = vmul.f32 %v2146_v29, %v1616_v33 }
 0xe54   :  { %1625 = vrot.lane.b32.xlu1 %v1620_v20, %s2154_s24 }
 0xec2   :  { %v1624_v3 = vpop.permute.xlu0 %1623 }
 0xec3   :  { %v1629_v4 = vadd.f32 %v1624_v3, %v1609_v2 }
 0xec5   :  { %2147 = vtanh.f32 %v1629_v4 }
 0xec6   :  { %v1626_v6 = vpop.permute.xlu1 %1625 }
 0xec7   :  { %v1630_v27 = vadd.f32 %v1626_v6, %v1610_v5 }
 0xec9   :  { %2149 = vtanh.f32 %v1630_v27 }
 0xed2   :  { %v2148_v31 = vpop.eup %2147 }
 0xed3   :  { %1635 = vrot.lane.b32.xlu0 %v2148_v31, %s2157_s25 }
 0xed6   :  { %v2150_v7 = vpop.eup %2149 }
 0xed7   :  { %1637 = vrot.lane.b32.xlu1 %v2150_v7, %s2157_s25 }
 0xf45   :  { %v1636_v32 = vpop.permute.xlu0 %1635 }
 0xf46   :  { %v1641_v9 = vmul.f32 %v2144_v58, %v1636_v32 }
 0xf48   :  { %1645 = vrot.lane.b32.xlu0 %v1641_v9, %s2164_s1 }
 0xf49   :  { %v1638_v34 = vpop.permute.xlu1 %1637 }
 0xf4a   :  { %v1642_v55 = vmul.f32 %v2146_v29, %v1638_v34 }
 0xf4c   :  { %1647 = vrot.lane.b32.xlu1 %v1642_v55, %s2164_s1 }
 0xfba   :  { %v1646_v10 = vpop.permute.xlu0 %1645 }
 0xfbb   :  { %1652 = vst.msk [vmem:[%s2585_s2] sm:$0xff] %vm1651_vm10, %v1646_v10 }
 0xfbe   :  { %v1648_v59 = vpop.permute.xlu1 %1647 }
 0xfbf   :  { %1653 = vst.msk [vmem:[%s2585_s2 + $0x8] sm:$0xff] %vm1651_vm10, %v1648_v59 }

</bundles_post_ra>
